<compile_context>
chip_gen: v5e
topology: v5e:2x2
jax: 0.10.0
libtpu: 0.0.40
codegen_flags: <defaults>
</compile_context>

<pallas_src>
import functools

import jax
import jax.numpy as jnp
from jax import lax
from jax.experimental import pallas as pl
from jax.experimental.pallas import tpu as pltpu


def _encoder_kernel(*refs, width, height, n_total, drop_rate):
    """conv3x3+bias+ReLU -> conv3x3+bias+ReLU -> optional inverted dropout.

    refs (drop_rate > 0):  seed_ref, x_ref, w1_ref, b1_ref, w2_ref, b2_ref, o_ref
    refs (drop_rate == 0): x_ref, w1_ref, b1_ref, w2_ref, b2_ref, o_ref

      x_ref : (Cin, Nblk)  channel-major; Nblk = B_blk * H * W (image-aligned)
      w*_ref: (9, Cout, C) per-tap weight slabs (bf16 or f32)
      b*_ref: (Cout, 1)    f32
      o_ref : (Cout, Nblk) lane-dense output block
    """
    if drop_rate > 0.0:
        seed_ref = refs[0]
        x_ref, w1_ref, b1_ref, w2_ref, b2_ref, o_ref = refs[1:]
    else:
        x_ref, w1_ref, b1_ref, w2_ref, b2_ref, o_ref = refs

    hw = width * height
    n = x_ref.shape[-1]

    # ---- Boundary masks, generated in-kernel (cheap VPU filler, no HBM) ----
    # mask[t][0, q] = 1 iff tap t of pixel (q mod HW) stays inside its image.
    col = lax.broadcasted_iota(jnp.int32, (1, n), 1)
    if (width & (width - 1)) == 0 and (hw & (hw - 1)) == 0:
        # power-of-two fast path: shifts/ands only
        xpos = col & (width - 1)
        ypos = (col & (hw - 1)) >> ((width - 1).bit_length())
    else:
        p = col % hw
        xpos = p % width
        ypos = p // width
    masks = []
    for t in range(9):
        dy, dx = t // 3 - 1, t % 3 - 1
        ok = ((ypos + dy >= 0) & (ypos + dy < height) &
              (xpos + dx >= 0) & (xpos + dx < width))
        masks.append(ok.astype(jnp.float32))

    def conv3x3_relu(feat, w_ref, b_ref):
        # feat: (C, N) f32 -> (Cout, N) f32.
        # Each tap is a static roll of the flattened map (wrap positions are
        # zeroed by the boundary mask), accumulated as nine (Cout, C) @ (C, N)
        # MXU matmuls -- no padded copy, no (9C, N) im2col buffer.
        # Elementwise math stays f32; operands are cast to the weight dtype
        # (bf16 on v6e/v7x) right before the dot, accumulation is f32.
        cdtype = w_ref.dtype
        acc = None
        for t in range(9):
            dy, dx = t // 3 - 1, t % 3 - 1
            d = dy * width + dx
            tap = feat if d == 0 else jnp.roll(feat, -d, axis=1)
            tap = tap * masks[t]                              # f32 (VPU)
            part = jnp.dot(w_ref[t], tap.astype(cdtype),
                           preferred_element_type=jnp.float32)
            acc = part if acc is None else acc + part
        return jnp.maximum(acc + b_ref[...], 0.0)             # bias + ReLU

    feat0 = x_ref[...].astype(jnp.float32)                    # (Cin, N)
    hmid = conv3x3_relu(feat0, w1_ref, b1_ref)                 # conv1 + ReLU
    y = conv3x3_relu(hmid, w2_ref, b2_ref)                     # conv2 + ReLU

    if drop_rate > 0.0:
        # Training-mode inverted dropout via a portable counter-based hash
        # (int ops only -> lowers on Mosaic and under TPU-interpret mode).
        # The element index includes the grid offset, so different batch
        # blocks / tiles get independent dropout masks.
        cout, nb = y.shape
        row = lax.broadcasted_iota(jnp.int32, (cout, nb), 0)
        colk = lax.broadcasted_iota(jnp.int32, (cout, nb), 1) \
            + pl.program_id(0) * nb
        gidx = (row * jnp.int32(n_total) + colk).astype(jnp.uint32)
        seed_u = seed_ref[0].astype(jnp.uint32)
        h = gidx * jnp.uint32(0x9E3779B1) + seed_u * jnp.uint32(0x85EBCA6B)
        h = h ^ (h >> 16)
        h = h * jnp.uint32(0x7FEB352D)
        h = h ^ (h >> 15)
        h = h * jnp.uint32(0x846CA68B)
        h = h ^ (h >> 16)
        r24 = (h & jnp.uint32(0x00FFFFFF)).astype(jnp.int32)   # uniform [0,2^24)
        thresh = jnp.int32(int(round(drop_rate * (1 << 24))))
        keep = r24 >= thresh                                   # P(keep)=1-p
        y = jnp.where(keep, y * (1.0 / (1.0 - drop_rate)), 0.0)

    o_ref[...] = y.astype(o_ref.dtype)


@functools.partial(jax.jit, static_argnames=("drop_rate", "matmul_in_bf16"))
def encoder_forward(x_nchw, w1, b1, w2, b2, *, drop_rate=0.0, rng_seed=0,
                    matmul_in_bf16=True):
    """Forward pass of _Encoder. x_nchw: (B, Cin, H, W) -> (B, Cout, H, W)."""
    B, Cin, H, W = x_nchw.shape
    Cout = w1.shape[0]
    HW = H * W

    # Channel-major batch folding: (B, Cin, H, W) -> (Cin, B*HW).  Loads,
    # stores and the MXU N dim are all lane-dense (multiple of 128 here).
    x_cm = jnp.transpose(x_nchw.reshape(B, Cin, HW), (1, 0, 2)).reshape(Cin, B * HW)

    cdtype = jnp.bfloat16 if matmul_in_bf16 else jnp.float32
    # OIHW -> (kh*kw, Cout, Cin): per-tap weight slabs (no big im2col weights).
    w1t = jnp.transpose(w1, (2, 3, 0, 1)).reshape(9, Cout, Cin).astype(cdtype)
    w2t = jnp.transpose(w2, (2, 3, 0, 1)).reshape(9, Cout, Cout).astype(cdtype)
    b1c = b1.reshape(Cout, 1).astype(jnp.float32)
    b2c = b2.reshape(Cout, 1).astype(jnp.float32)

    # Fold as many whole images per grid step as comfortably fit in VMEM; for
    # the toy sizes that is the whole batch (grid=(1,)): no per-step overhead.
    per_img = (Cin + 3 * Cout) * HW * 4               # rough live f32 bytes/img
    b_blk = max(1, min(B, (8 << 20) // max(per_img, 1)))
    while b_blk > 1 and B % b_blk != 0:
        b_blk -= 1
    if b_blk < B and (b_blk * HW) % 128 != 0:
        b_blk = B                                      # keep blocks (8,128)-legal
    n_blk = b_blk * HW
    grid = (B // b_blk,)

    blk_bytes = ((Cin + 2 * Cout) * n_blk * 4
                 + 9 * Cout * (Cin + Cout) * jnp.dtype(cdtype).itemsize
                 + 2 * Cout * 4)
    vmem_limit = int(min(max(32 * 1024 * 1024, 8 * blk_bytes),
                         100 * 1024 * 1024))
    compiler_params = pltpu.CompilerParams(
        dimension_semantics=("parallel",),
        vmem_limit_bytes=vmem_limit,
    )

    kernel = functools.partial(_encoder_kernel, width=W, height=H,
                               n_total=B * HW, drop_rate=float(drop_rate))

    data_specs = [
        pl.BlockSpec((Cin, n_blk), lambda i, *_: (0, i)),        # x (channel-major)
        pl.BlockSpec((9, Cout, Cin), lambda i, *_: (0, 0, 0)),   # w1 taps
        pl.BlockSpec((Cout, 1), lambda i, *_: (0, 0)),           # b1
        pl.BlockSpec((9, Cout, Cout), lambda i, *_: (0, 0, 0)),  # w2 taps
        pl.BlockSpec((Cout, 1), lambda i, *_: (0, 0)),           # b2
    ]
    out_spec = pl.BlockSpec((Cout, n_blk), lambda i, *_: (0, i))
    out_shape = jax.ShapeDtypeStruct((Cout, B * HW), x_nchw.dtype)

    if drop_rate > 0.0:
        seed = jnp.asarray(rng_seed, jnp.int32).reshape(1)
        grid_spec = pltpu.PrefetchScalarGridSpec(
            num_scalar_prefetch=1, grid=grid,
            in_specs=data_specs, out_specs=out_spec)
        out_cm = pl.pallas_call(kernel, out_shape=out_shape, grid_spec=grid_spec,
                                compiler_params=compiler_params)(
            seed, x_cm, w1t, b1c, w2t, b2c)
    else:
        # Inference path: no dropout -> no seed scalar-prefetch argument.
        grid_spec = pltpu.PrefetchScalarGridSpec(
            num_scalar_prefetch=0, grid=grid,
            in_specs=data_specs, out_specs=out_spec)
        out_cm = pl.pallas_call(kernel, out_shape=out_shape, grid_spec=grid_spec,
                                compiler_params=compiler_params)(
            x_cm, w1t, b1c, w2t, b2c)

    return jnp.transpose(out_cm.reshape(Cout, B, H, W), (1, 0, 2, 3))


def init_encoder_params(key, n_in_feat, n_out_feat, dtype=jnp.float32):
    """PyTorch-Conv2d-style init; weights stored OIHW like nn.Conv2d."""
    k1, k2, k3, k4 = jax.random.split(key, 4)
    bound1 = 1.0 / (n_in_feat * 9.0) ** 0.5
    bound2 = 1.0 / (n_out_feat * 9.0) ** 0.5
    w1 = jax.random.uniform(k1, (n_out_feat, n_in_feat, 3, 3), dtype,
                            minval=-bound1, maxval=bound1)
    b1 = jax.random.uniform(k2, (n_out_feat,), dtype,
                            minval=-bound1, maxval=bound1)
    w2 = jax.random.uniform(k3, (n_out_feat, n_out_feat, 3, 3), dtype,
                            minval=-bound2, maxval=bound2)
    b2 = jax.random.uniform(k4, (n_out_feat,), dtype,
                            minval=-bound2, maxval=bound2)
    return w1, b1, w2, b2


def _reference_forward(x, w1, b1, w2, b2):
    """Pure-JAX reference (lax conv, NCHW/OIHW) for correctness checking."""
    dn = ("NCHW", "OIHW", "NCHW")
    y = lax.conv_general_dilated(x, w1, (1, 1), "SAME", dimension_numbers=dn)
    y = jnp.maximum(y + b1[None, :, None, None], 0.0)
    y = lax.conv_general_dilated(y, w2, (1, 1), "SAME", dimension_numbers=dn)
    y = jnp.maximum(y + b2[None, :, None, None], 0.0)
    return y


if __name__ == "__main__":
    n_in_feat, n_out_feat = 4, 8
    B, H, W = 2, 16, 16

    key = jax.random.PRNGKey(0)
    kx, kp = jax.random.split(key)
    x = jax.random.normal(kx, (B, n_in_feat, H, W), jnp.float32)
    w1, b1, w2, b2 = init_encoder_params(kp, n_in_feat, n_out_feat)

    ref = _reference_forward(x, w1, b1, w2, b2)

    # Exact path (f32 MXU operands) -- tight tolerance vs. the lax reference.
    out_f32 = jax.block_until_ready(
        encoder_forward(x, w1, b1, w2, b2, matmul_in_bf16=False))
    assert out_f32.shape == (B, n_out_feat, H, W), out_f32.shape
    assert jnp.allclose(out_f32, ref, atol=1e-4, rtol=1e-4), (
        float(jnp.max(jnp.abs(out_f32 - ref))))

    # Default fast path (bf16 MXU operands, f32 accumulation) -- looser tol.
    out = jax.block_until_ready(encoder_forward(x, w1, b1, w2, b2))
    assert out.shape == (B, n_out_feat, H, W)
    assert jnp.allclose(out, ref, atol=5e-2, rtol=5e-2), (
        float(jnp.max(jnp.abs(out - ref))))

    # Training-mode dropout (drop_rate > 0): kept values must equal the
    # no-dropout output scaled by 1/(1-p); dropped values are exactly 0.
    p = 0.25
    out_d = jax.block_until_ready(
        encoder_forward(x, w1, b1, w2, b2, drop_rate=p, rng_seed=123))
    assert out_d.shape == (B, n_out_feat, H, W)
    assert bool(jnp.all(jnp.isfinite(out_d)))
    kept = out_d != 0
    assert jnp.allclose(jnp.where(kept, out_d, 0.0),
                        jnp.where(kept, out / (1.0 - p), 0.0),
                        atol=1e-4, rtol=1e-4)
    pos = out > 0
    kept_frac = float(jnp.sum(kept & pos) / jnp.maximum(jnp.sum(pos), 1))
    assert 0.5 < kept_frac < 0.95, kept_frac

    print("KERNEL_OK")
</pallas_src>

<mosaic_0001>
module attributes {stable_mosaic.version = 11 : i64} {
  func.func @_encoder_kernel(%arg0: i32, %arg1: memref<4x512xf32, #tpu.memory_space<vmem>>, %arg2: memref<9x8x4xf32, #tpu.memory_space<vmem>>, %arg3: memref<8x1xf32, #tpu.memory_space<vmem>>, %arg4: memref<9x8x8xf32, #tpu.memory_space<vmem>>, %arg5: memref<8x1xf32, #tpu.memory_space<vmem>>, %arg6: memref<8x512xf32, #tpu.memory_space<vmem>>) attributes {dimension_semantics = [#tpu.dimension_semantics<parallel>], iteration_bounds = array<i64: 1>, scalar_prefetch = 0 : i64, scratch_operands = 0 : i64, tpu.core_type = #tpu.core_type<tc>, window_params = [{transform_indices = @transform_0, window_bounds = array<i64: 4, 512>}, {pipeline_mode = #tpu.pipeline_mode<synchronous>, transform_indices = @transform_1, window_bounds = array<i64: 9, 8, 4>}, {pipeline_mode = #tpu.pipeline_mode<synchronous>, transform_indices = @transform_2, window_bounds = array<i64: 8, 1>}, {pipeline_mode = #tpu.pipeline_mode<synchronous>, transform_indices = @transform_3, window_bounds = array<i64: 9, 8, 8>}, {pipeline_mode = #tpu.pipeline_mode<synchronous>, transform_indices = @transform_4, window_bounds = array<i64: 8, 1>}, {transform_indices = @transform_5, window_bounds = array<i64: 8, 512>}]} {
    %0 = tpu.iota {dimensions = array<i32: 1>} : vector<1x512xi32>
    %c15_i32 = arith.constant 15 : i32
    %1 = vector.broadcast %c15_i32 : i32 to vector<1x512xi32>
    %2 = arith.andi %0, %1 : vector<1x512xi32>
    %c255_i32 = arith.constant 255 : i32
    %3 = vector.broadcast %c255_i32 : i32 to vector<1x512xi32>
    %4 = arith.andi %0, %3 : vector<1x512xi32>
    %c4_i32 = arith.constant 4 : i32
    %5 = vector.broadcast %c4_i32 : i32 to vector<1x512xi32>
    %6 = arith.shrsi %4, %5 : vector<1x512xi32>
    %c-1_i32 = arith.constant -1 : i32
    %7 = vector.broadcast %c-1_i32 : i32 to vector<1x512xi32>
    %8 = arith.addi %6, %7 : vector<1x512xi32>
    %c0_i32 = arith.constant 0 : i32
    %9 = vector.broadcast %c0_i32 : i32 to vector<1x512xi32>
    %10 = arith.cmpi sge, %8, %9 : vector<1x512xi32>
    %c-1_i32_0 = arith.constant -1 : i32
    %11 = vector.broadcast %c-1_i32_0 : i32 to vector<1x512xi32>
    %12 = arith.addi %6, %11 : vector<1x512xi32>
    %c16_i32 = arith.constant 16 : i32
    %13 = vector.broadcast %c16_i32 : i32 to vector<1x512xi32>
    %14 = arith.cmpi slt, %12, %13 : vector<1x512xi32>
    %15 = arith.andi %10, %14 : vector<1x512xi1>
    %c-1_i32_1 = arith.constant -1 : i32
    %16 = vector.broadcast %c-1_i32_1 : i32 to vector<1x512xi32>
    %17 = arith.addi %2, %16 : vector<1x512xi32>
    %c0_i32_2 = arith.constant 0 : i32
    %18 = vector.broadcast %c0_i32_2 : i32 to vector<1x512xi32>
    %19 = arith.cmpi sge, %17, %18 : vector<1x512xi32>
    %20 = arith.andi %15, %19 : vector<1x512xi1>
    %c-1_i32_3 = arith.constant -1 : i32
    %21 = vector.broadcast %c-1_i32_3 : i32 to vector<1x512xi32>
    %22 = arith.addi %2, %21 : vector<1x512xi32>
    %c16_i32_4 = arith.constant 16 : i32
    %23 = vector.broadcast %c16_i32_4 : i32 to vector<1x512xi32>
    %24 = arith.cmpi slt, %22, %23 : vector<1x512xi32>
    %25 = arith.andi %20, %24 : vector<1x512xi1>
    %26 = arith.extui %25 : vector<1x512xi1> to vector<1x512xi32>
    %27 = arith.sitofp %26 : vector<1x512xi32> to vector<1x512xf32>
    %c-1_i32_5 = arith.constant -1 : i32
    %28 = vector.broadcast %c-1_i32_5 : i32 to vector<1x512xi32>
    %29 = arith.addi %6, %28 : vector<1x512xi32>
    %c0_i32_6 = arith.constant 0 : i32
    %30 = vector.broadcast %c0_i32_6 : i32 to vector<1x512xi32>
    %31 = arith.cmpi sge, %29, %30 : vector<1x512xi32>
    %c-1_i32_7 = arith.constant -1 : i32
    %32 = vector.broadcast %c-1_i32_7 : i32 to vector<1x512xi32>
    %33 = arith.addi %6, %32 : vector<1x512xi32>
    %c16_i32_8 = arith.constant 16 : i32
    %34 = vector.broadcast %c16_i32_8 : i32 to vector<1x512xi32>
    %35 = arith.cmpi slt, %33, %34 : vector<1x512xi32>
    %36 = arith.andi %31, %35 : vector<1x512xi1>
    %c0_i32_9 = arith.constant 0 : i32
    %37 = vector.broadcast %c0_i32_9 : i32 to vector<1x512xi32>
    %38 = arith.addi %2, %37 : vector<1x512xi32>
    %c0_i32_10 = arith.constant 0 : i32
    %39 = vector.broadcast %c0_i32_10 : i32 to vector<1x512xi32>
    %40 = arith.cmpi sge, %38, %39 : vector<1x512xi32>
    %41 = arith.andi %36, %40 : vector<1x512xi1>
    %c0_i32_11 = arith.constant 0 : i32
    %42 = vector.broadcast %c0_i32_11 : i32 to vector<1x512xi32>
    %43 = arith.addi %2, %42 : vector<1x512xi32>
    %c16_i32_12 = arith.constant 16 : i32
    %44 = vector.broadcast %c16_i32_12 : i32 to vector<1x512xi32>
    %45 = arith.cmpi slt, %43, %44 : vector<1x512xi32>
    %46 = arith.andi %41, %45 : vector<1x512xi1>
    %47 = arith.extui %46 : vector<1x512xi1> to vector<1x512xi32>
    %48 = arith.sitofp %47 : vector<1x512xi32> to vector<1x512xf32>
    %c-1_i32_13 = arith.constant -1 : i32
    %49 = vector.broadcast %c-1_i32_13 : i32 to vector<1x512xi32>
    %50 = arith.addi %6, %49 : vector<1x512xi32>
    %c0_i32_14 = arith.constant 0 : i32
    %51 = vector.broadcast %c0_i32_14 : i32 to vector<1x512xi32>
    %52 = arith.cmpi sge, %50, %51 : vector<1x512xi32>
    %c-1_i32_15 = arith.constant -1 : i32
    %53 = vector.broadcast %c-1_i32_15 : i32 to vector<1x512xi32>
    %54 = arith.addi %6, %53 : vector<1x512xi32>
    %c16_i32_16 = arith.constant 16 : i32
    %55 = vector.broadcast %c16_i32_16 : i32 to vector<1x512xi32>
    %56 = arith.cmpi slt, %54, %55 : vector<1x512xi32>
    %57 = arith.andi %52, %56 : vector<1x512xi1>
    %c1_i32 = arith.constant 1 : i32
    %58 = vector.broadcast %c1_i32 : i32 to vector<1x512xi32>
    %59 = arith.addi %2, %58 : vector<1x512xi32>
    %c0_i32_17 = arith.constant 0 : i32
    %60 = vector.broadcast %c0_i32_17 : i32 to vector<1x512xi32>
    %61 = arith.cmpi sge, %59, %60 : vector<1x512xi32>
    %62 = arith.andi %57, %61 : vector<1x512xi1>
    %c1_i32_18 = arith.constant 1 : i32
    %63 = vector.broadcast %c1_i32_18 : i32 to vector<1x512xi32>
    %64 = arith.addi %2, %63 : vector<1x512xi32>
    %c16_i32_19 = arith.constant 16 : i32
    %65 = vector.broadcast %c16_i32_19 : i32 to vector<1x512xi32>
    %66 = arith.cmpi slt, %64, %65 : vector<1x512xi32>
    %67 = arith.andi %62, %66 : vector<1x512xi1>
    %68 = arith.extui %67 : vector<1x512xi1> to vector<1x512xi32>
    %69 = arith.sitofp %68 : vector<1x512xi32> to vector<1x512xf32>
    %c0_i32_20 = arith.constant 0 : i32
    %70 = vector.broadcast %c0_i32_20 : i32 to vector<1x512xi32>
    %71 = arith.addi %6, %70 : vector<1x512xi32>
    %c0_i32_21 = arith.constant 0 : i32
    %72 = vector.broadcast %c0_i32_21 : i32 to vector<1x512xi32>
    %73 = arith.cmpi sge, %71, %72 : vector<1x512xi32>
    %c0_i32_22 = arith.constant 0 : i32
    %74 = vector.broadcast %c0_i32_22 : i32 to vector<1x512xi32>
    %75 = arith.addi %6, %74 : vector<1x512xi32>
    %c16_i32_23 = arith.constant 16 : i32
    %76 = vector.broadcast %c16_i32_23 : i32 to vector<1x512xi32>
    %77 = arith.cmpi slt, %75, %76 : vector<1x512xi32>
    %78 = arith.andi %73, %77 : vector<1x512xi1>
    %c-1_i32_24 = arith.constant -1 : i32
    %79 = vector.broadcast %c-1_i32_24 : i32 to vector<1x512xi32>
    %80 = arith.addi %2, %79 : vector<1x512xi32>
    %c0_i32_25 = arith.constant 0 : i32
    %81 = vector.broadcast %c0_i32_25 : i32 to vector<1x512xi32>
    %82 = arith.cmpi sge, %80, %81 : vector<1x512xi32>
    %83 = arith.andi %78, %82 : vector<1x512xi1>
    %c-1_i32_26 = arith.constant -1 : i32
    %84 = vector.broadcast %c-1_i32_26 : i32 to vector<1x512xi32>
    %85 = arith.addi %2, %84 : vector<1x512xi32>
    %c16_i32_27 = arith.constant 16 : i32
    %86 = vector.broadcast %c16_i32_27 : i32 to vector<1x512xi32>
    %87 = arith.cmpi slt, %85, %86 : vector<1x512xi32>
    %88 = arith.andi %83, %87 : vector<1x512xi1>
    %89 = arith.extui %88 : vector<1x512xi1> to vector<1x512xi32>
    %90 = arith.sitofp %89 : vector<1x512xi32> to vector<1x512xf32>
    %c0_i32_28 = arith.constant 0 : i32
    %91 = vector.broadcast %c0_i32_28 : i32 to vector<1x512xi32>
    %92 = arith.addi %6, %91 : vector<1x512xi32>
    %c0_i32_29 = arith.constant 0 : i32
    %93 = vector.broadcast %c0_i32_29 : i32 to vector<1x512xi32>
    %94 = arith.cmpi sge, %92, %93 : vector<1x512xi32>
    %c0_i32_30 = arith.constant 0 : i32
    %95 = vector.broadcast %c0_i32_30 : i32 to vector<1x512xi32>
    %96 = arith.addi %6, %95 : vector<1x512xi32>
    %c16_i32_31 = arith.constant 16 : i32
    %97 = vector.broadcast %c16_i32_31 : i32 to vector<1x512xi32>
    %98 = arith.cmpi slt, %96, %97 : vector<1x512xi32>
    %99 = arith.andi %94, %98 : vector<1x512xi1>
    %c0_i32_32 = arith.constant 0 : i32
    %100 = vector.broadcast %c0_i32_32 : i32 to vector<1x512xi32>
    %101 = arith.addi %2, %100 : vector<1x512xi32>
    %c0_i32_33 = arith.constant 0 : i32
    %102 = vector.broadcast %c0_i32_33 : i32 to vector<1x512xi32>
    %103 = arith.cmpi sge, %101, %102 : vector<1x512xi32>
    %104 = arith.andi %99, %103 : vector<1x512xi1>
    %c0_i32_34 = arith.constant 0 : i32
    %105 = vector.broadcast %c0_i32_34 : i32 to vector<1x512xi32>
    %106 = arith.addi %2, %105 : vector<1x512xi32>
    %c16_i32_35 = arith.constant 16 : i32
    %107 = vector.broadcast %c16_i32_35 : i32 to vector<1x512xi32>
    %108 = arith.cmpi slt, %106, %107 : vector<1x512xi32>
    %109 = arith.andi %104, %108 : vector<1x512xi1>
    %110 = arith.extui %109 : vector<1x512xi1> to vector<1x512xi32>
    %111 = arith.sitofp %110 : vector<1x512xi32> to vector<1x512xf32>
    %c0_i32_36 = arith.constant 0 : i32
    %112 = vector.broadcast %c0_i32_36 : i32 to vector<1x512xi32>
    %113 = arith.addi %6, %112 : vector<1x512xi32>
    %c0_i32_37 = arith.constant 0 : i32
    %114 = vector.broadcast %c0_i32_37 : i32 to vector<1x512xi32>
    %115 = arith.cmpi sge, %113, %114 : vector<1x512xi32>
    %c0_i32_38 = arith.constant 0 : i32
    %116 = vector.broadcast %c0_i32_38 : i32 to vector<1x512xi32>
    %117 = arith.addi %6, %116 : vector<1x512xi32>
    %c16_i32_39 = arith.constant 16 : i32
    %118 = vector.broadcast %c16_i32_39 : i32 to vector<1x512xi32>
    %119 = arith.cmpi slt, %117, %118 : vector<1x512xi32>
    %120 = arith.andi %115, %119 : vector<1x512xi1>
    %c1_i32_40 = arith.constant 1 : i32
    %121 = vector.broadcast %c1_i32_40 : i32 to vector<1x512xi32>
    %122 = arith.addi %2, %121 : vector<1x512xi32>
    %c0_i32_41 = arith.constant 0 : i32
    %123 = vector.broadcast %c0_i32_41 : i32 to vector<1x512xi32>
    %124 = arith.cmpi sge, %122, %123 : vector<1x512xi32>
    %125 = arith.andi %120, %124 : vector<1x512xi1>
    %c1_i32_42 = arith.constant 1 : i32
    %126 = vector.broadcast %c1_i32_42 : i32 to vector<1x512xi32>
    %127 = arith.addi %2, %126 : vector<1x512xi32>
    %c16_i32_43 = arith.constant 16 : i32
    %128 = vector.broadcast %c16_i32_43 : i32 to vector<1x512xi32>
    %129 = arith.cmpi slt, %127, %128 : vector<1x512xi32>
    %130 = arith.andi %125, %129 : vector<1x512xi1>
    %131 = arith.extui %130 : vector<1x512xi1> to vector<1x512xi32>
    %132 = arith.sitofp %131 : vector<1x512xi32> to vector<1x512xf32>
    %c1_i32_44 = arith.constant 1 : i32
    %133 = vector.broadcast %c1_i32_44 : i32 to vector<1x512xi32>
    %134 = arith.addi %6, %133 : vector<1x512xi32>
    %c0_i32_45 = arith.constant 0 : i32
    %135 = vector.broadcast %c0_i32_45 : i32 to vector<1x512xi32>
    %136 = arith.cmpi sge, %134, %135 : vector<1x512xi32>
    %c1_i32_46 = arith.constant 1 : i32
    %137 = vector.broadcast %c1_i32_46 : i32 to vector<1x512xi32>
    %138 = arith.addi %6, %137 : vector<1x512xi32>
    %c16_i32_47 = arith.constant 16 : i32
    %139 = vector.broadcast %c16_i32_47 : i32 to vector<1x512xi32>
    %140 = arith.cmpi slt, %138, %139 : vector<1x512xi32>
    %141 = arith.andi %136, %140 : vector<1x512xi1>
    %c-1_i32_48 = arith.constant -1 : i32
    %142 = vector.broadcast %c-1_i32_48 : i32 to vector<1x512xi32>
    %143 = arith.addi %2, %142 : vector<1x512xi32>
    %c0_i32_49 = arith.constant 0 : i32
    %144 = vector.broadcast %c0_i32_49 : i32 to vector<1x512xi32>
    %145 = arith.cmpi sge, %143, %144 : vector<1x512xi32>
    %146 = arith.andi %141, %145 : vector<1x512xi1>
    %c-1_i32_50 = arith.constant -1 : i32
    %147 = vector.broadcast %c-1_i32_50 : i32 to vector<1x512xi32>
    %148 = arith.addi %2, %147 : vector<1x512xi32>
    %c16_i32_51 = arith.constant 16 : i32
    %149 = vector.broadcast %c16_i32_51 : i32 to vector<1x512xi32>
    %150 = arith.cmpi slt, %148, %149 : vector<1x512xi32>
    %151 = arith.andi %146, %150 : vector<1x512xi1>
    %152 = arith.extui %151 : vector<1x512xi1> to vector<1x512xi32>
    %153 = arith.sitofp %152 : vector<1x512xi32> to vector<1x512xf32>
    %c1_i32_52 = arith.constant 1 : i32
    %154 = vector.broadcast %c1_i32_52 : i32 to vector<1x512xi32>
    %155 = arith.addi %6, %154 : vector<1x512xi32>
    %c0_i32_53 = arith.constant 0 : i32
    %156 = vector.broadcast %c0_i32_53 : i32 to vector<1x512xi32>
    %157 = arith.cmpi sge, %155, %156 : vector<1x512xi32>
    %c1_i32_54 = arith.constant 1 : i32
    %158 = vector.broadcast %c1_i32_54 : i32 to vector<1x512xi32>
    %159 = arith.addi %6, %158 : vector<1x512xi32>
    %c16_i32_55 = arith.constant 16 : i32
    %160 = vector.broadcast %c16_i32_55 : i32 to vector<1x512xi32>
    %161 = arith.cmpi slt, %159, %160 : vector<1x512xi32>
    %162 = arith.andi %157, %161 : vector<1x512xi1>
    %c0_i32_56 = arith.constant 0 : i32
    %163 = vector.broadcast %c0_i32_56 : i32 to vector<1x512xi32>
    %164 = arith.addi %2, %163 : vector<1x512xi32>
    %c0_i32_57 = arith.constant 0 : i32
    %165 = vector.broadcast %c0_i32_57 : i32 to vector<1x512xi32>
    %166 = arith.cmpi sge, %164, %165 : vector<1x512xi32>
    %167 = arith.andi %162, %166 : vector<1x512xi1>
    %c0_i32_58 = arith.constant 0 : i32
    %168 = vector.broadcast %c0_i32_58 : i32 to vector<1x512xi32>
    %169 = arith.addi %2, %168 : vector<1x512xi32>
    %c16_i32_59 = arith.constant 16 : i32
    %170 = vector.broadcast %c16_i32_59 : i32 to vector<1x512xi32>
    %171 = arith.cmpi slt, %169, %170 : vector<1x512xi32>
    %172 = arith.andi %167, %171 : vector<1x512xi1>
    %173 = arith.extui %172 : vector<1x512xi1> to vector<1x512xi32>
    %174 = arith.sitofp %173 : vector<1x512xi32> to vector<1x512xf32>
    %c1_i32_60 = arith.constant 1 : i32
    %175 = vector.broadcast %c1_i32_60 : i32 to vector<1x512xi32>
    %176 = arith.addi %6, %175 : vector<1x512xi32>
    %c0_i32_61 = arith.constant 0 : i32
    %177 = vector.broadcast %c0_i32_61 : i32 to vector<1x512xi32>
    %178 = arith.cmpi sge, %176, %177 : vector<1x512xi32>
    %c1_i32_62 = arith.constant 1 : i32
    %179 = vector.broadcast %c1_i32_62 : i32 to vector<1x512xi32>
    %180 = arith.addi %6, %179 : vector<1x512xi32>
    %c16_i32_63 = arith.constant 16 : i32
    %181 = vector.broadcast %c16_i32_63 : i32 to vector<1x512xi32>
    %182 = arith.cmpi slt, %180, %181 : vector<1x512xi32>
    %183 = arith.andi %178, %182 : vector<1x512xi1>
    %c1_i32_64 = arith.constant 1 : i32
    %184 = vector.broadcast %c1_i32_64 : i32 to vector<1x512xi32>
    %185 = arith.addi %2, %184 : vector<1x512xi32>
    %c0_i32_65 = arith.constant 0 : i32
    %186 = vector.broadcast %c0_i32_65 : i32 to vector<1x512xi32>
    %187 = arith.cmpi sge, %185, %186 : vector<1x512xi32>
    %188 = arith.andi %183, %187 : vector<1x512xi1>
    %c1_i32_66 = arith.constant 1 : i32
    %189 = vector.broadcast %c1_i32_66 : i32 to vector<1x512xi32>
    %190 = arith.addi %2, %189 : vector<1x512xi32>
    %c16_i32_67 = arith.constant 16 : i32
    %191 = vector.broadcast %c16_i32_67 : i32 to vector<1x512xi32>
    %192 = arith.cmpi slt, %190, %191 : vector<1x512xi32>
    %193 = arith.andi %188, %192 : vector<1x512xi1>
    %194 = arith.extui %193 : vector<1x512xi1> to vector<1x512xi32>
    %195 = arith.sitofp %194 : vector<1x512xi32> to vector<1x512xf32>
    %c0 = arith.constant 0 : index
    %c0_68 = arith.constant 0 : index
    %196 = vector.load %arg1[%c0, %c0_68] : memref<4x512xf32, #tpu.memory_space<vmem>>, vector<4x512xf32>
    %197 = vector.extract_strided_slice %196 {offsets = [0, 495], sizes = [4, 17], strides = [1, 1]} : vector<4x512xf32> to vector<4x17xf32>
    %198 = vector.extract_strided_slice %196 {offsets = [0, 0], sizes = [4, 495], strides = [1, 1]} : vector<4x512xf32> to vector<4x495xf32>
    %199 = tpu.concatenate %197, %198 in 1 : vector<4x17xf32>, vector<4x495xf32> -> vector<4x512xf32>
    %200 = vector.broadcast %27 : vector<1x512xf32> to vector<4x512xf32>
    %201 = arith.mulf %199, %200 : vector<4x512xf32>
    %c0_69 = arith.constant 0 : index
    %c0_70 = arith.constant 0 : index
    %c0_71 = arith.constant 0 : index
    %202 = vector.load %arg2[%c0_69, %c0_70, %c0_71] : memref<9x8x4xf32, #tpu.memory_space<vmem>>, vector<1x8x4xf32>
    %203 = vector.shape_cast %202 : vector<1x8x4xf32> to vector<8x4xf32>
    %cst = arith.constant dense<0.000000e+00> : vector<8x512xf32>
    %204 = tpu.matmul %203, %201, %cst {dimension_numbers = #tpu.dot_dimension_numbers<[1], [0], [0], [1], [0, 0, 1, 1], [], []>} : vector<8x4xf32>, vector<4x512xf32>, vector<8x512xf32> -> vector<8x512xf32>
    %205 = vector.extract_strided_slice %196 {offsets = [0, 496], sizes = [4, 16], strides = [1, 1]} : vector<4x512xf32> to vector<4x16xf32>
    %206 = vector.extract_strided_slice %196 {offsets = [0, 0], sizes = [4, 496], strides = [1, 1]} : vector<4x512xf32> to vector<4x496xf32>
    %207 = tpu.concatenate %205, %206 in 1 : vector<4x16xf32>, vector<4x496xf32> -> vector<4x512xf32>
    %208 = vector.broadcast %48 : vector<1x512xf32> to vector<4x512xf32>
    %209 = arith.mulf %207, %208 : vector<4x512xf32>
    %c1 = arith.constant 1 : index
    %c0_72 = arith.constant 0 : index
    %c0_73 = arith.constant 0 : index
    %210 = vector.load %arg2[%c1, %c0_72, %c0_73] : memref<9x8x4xf32, #tpu.memory_space<vmem>>, vector<1x8x4xf32>
    %211 = vector.shape_cast %210 : vector<1x8x4xf32> to vector<8x4xf32>
    %cst_74 = arith.constant dense<0.000000e+00> : vector<8x512xf32>
    %212 = tpu.matmul %211, %209, %cst_74 {dimension_numbers = #tpu.dot_dimension_numbers<[1], [0], [0], [1], [0, 0, 1, 1], [], []>} : vector<8x4xf32>, vector<4x512xf32>, vector<8x512xf32> -> vector<8x512xf32>
    %213 = arith.addf %204, %212 : vector<8x512xf32>
    %214 = vector.extract_strided_slice %196 {offsets = [0, 497], sizes = [4, 15], strides = [1, 1]} : vector<4x512xf32> to vector<4x15xf32>
    %215 = vector.extract_strided_slice %196 {offsets = [0, 0], sizes = [4, 497], strides = [1, 1]} : vector<4x512xf32> to vector<4x497xf32>
    %216 = tpu.concatenate %214, %215 in 1 : vector<4x15xf32>, vector<4x497xf32> -> vector<4x512xf32>
    %217 = vector.broadcast %69 : vector<1x512xf32> to vector<4x512xf32>
    %218 = arith.mulf %216, %217 : vector<4x512xf32>
    %c2 = arith.constant 2 : index
    %c0_75 = arith.constant 0 : index
    %c0_76 = arith.constant 0 : index
    %219 = vector.load %arg2[%c2, %c0_75, %c0_76] : memref<9x8x4xf32, #tpu.memory_space<vmem>>, vector<1x8x4xf32>
    %220 = vector.shape_cast %219 : vector<1x8x4xf32> to vector<8x4xf32>
    %cst_77 = arith.constant dense<0.000000e+00> : vector<8x512xf32>
    %221 = tpu.matmul %220, %218, %cst_77 {dimension_numbers = #tpu.dot_dimension_numbers<[1], [0], [0], [1], [0, 0, 1, 1], [], []>} : vector<8x4xf32>, vector<4x512xf32>, vector<8x512xf32> -> vector<8x512xf32>
    %222 = arith.addf %213, %221 : vector<8x512xf32>
    %223 = vector.extract_strided_slice %196 {offsets = [0, 511], sizes = [4, 1], strides = [1, 1]} : vector<4x512xf32> to vector<4x1xf32>
    %224 = vector.extract_strided_slice %196 {offsets = [0, 0], sizes = [4, 511], strides = [1, 1]} : vector<4x512xf32> to vector<4x511xf32>
    %225 = tpu.concatenate %223, %224 in 1 : vector<4x1xf32>, vector<4x511xf32> -> vector<4x512xf32>
    %226 = vector.broadcast %90 : vector<1x512xf32> to vector<4x512xf32>
    %227 = arith.mulf %225, %226 : vector<4x512xf32>
    %c3 = arith.constant 3 : index
    %c0_78 = arith.constant 0 : index
    %c0_79 = arith.constant 0 : index
    %228 = vector.load %arg2[%c3, %c0_78, %c0_79] : memref<9x8x4xf32, #tpu.memory_space<vmem>>, vector<1x8x4xf32>
    %229 = vector.shape_cast %228 : vector<1x8x4xf32> to vector<8x4xf32>
    %cst_80 = arith.constant dense<0.000000e+00> : vector<8x512xf32>
    %230 = tpu.matmul %229, %227, %cst_80 {dimension_numbers = #tpu.dot_dimension_numbers<[1], [0], [0], [1], [0, 0, 1, 1], [], []>} : vector<8x4xf32>, vector<4x512xf32>, vector<8x512xf32> -> vector<8x512xf32>
    %231 = arith.addf %222, %230 : vector<8x512xf32>
    %232 = vector.broadcast %111 : vector<1x512xf32> to vector<4x512xf32>
    %233 = arith.mulf %196, %232 : vector<4x512xf32>
    %c4 = arith.constant 4 : index
    %c0_81 = arith.constant 0 : index
    %c0_82 = arith.constant 0 : index
    %234 = vector.load %arg2[%c4, %c0_81, %c0_82] : memref<9x8x4xf32, #tpu.memory_space<vmem>>, vector<1x8x4xf32>
    %235 = vector.shape_cast %234 : vector<1x8x4xf32> to vector<8x4xf32>
    %cst_83 = arith.constant dense<0.000000e+00> : vector<8x512xf32>
    %236 = tpu.matmul %235, %233, %cst_83 {dimension_numbers = #tpu.dot_dimension_numbers<[1], [0], [0], [1], [0, 0, 1, 1], [], []>} : vector<8x4xf32>, vector<4x512xf32>, vector<8x512xf32> -> vector<8x512xf32>
    %237 = arith.addf %231, %236 : vector<8x512xf32>
    %238 = vector.extract_strided_slice %196 {offsets = [0, 1], sizes = [4, 511], strides = [1, 1]} : vector<4x512xf32> to vector<4x511xf32>
    %239 = vector.extract_strided_slice %196 {offsets = [0, 0], sizes = [4, 1], strides = [1, 1]} : vector<4x512xf32> to vector<4x1xf32>
    %240 = tpu.concatenate %238, %239 in 1 : vector<4x511xf32>, vector<4x1xf32> -> vector<4x512xf32>
    %241 = vector.broadcast %132 : vector<1x512xf32> to vector<4x512xf32>
    %242 = arith.mulf %240, %241 : vector<4x512xf32>
    %c5 = arith.constant 5 : index
    %c0_84 = arith.constant 0 : index
    %c0_85 = arith.constant 0 : index
    %243 = vector.load %arg2[%c5, %c0_84, %c0_85] : memref<9x8x4xf32, #tpu.memory_space<vmem>>, vector<1x8x4xf32>
    %244 = vector.shape_cast %243 : vector<1x8x4xf32> to vector<8x4xf32>
    %cst_86 = arith.constant dense<0.000000e+00> : vector<8x512xf32>
    %245 = tpu.matmul %244, %242, %cst_86 {dimension_numbers = #tpu.dot_dimension_numbers<[1], [0], [0], [1], [0, 0, 1, 1], [], []>} : vector<8x4xf32>, vector<4x512xf32>, vector<8x512xf32> -> vector<8x512xf32>
    %246 = arith.addf %237, %245 : vector<8x512xf32>
    %247 = vector.extract_strided_slice %196 {offsets = [0, 15], sizes = [4, 497], strides = [1, 1]} : vector<4x512xf32> to vector<4x497xf32>
    %248 = vector.extract_strided_slice %196 {offsets = [0, 0], sizes = [4, 15], strides = [1, 1]} : vector<4x512xf32> to vector<4x15xf32>
    %249 = tpu.concatenate %247, %248 in 1 : vector<4x497xf32>, vector<4x15xf32> -> vector<4x512xf32>
    %250 = vector.broadcast %153 : vector<1x512xf32> to vector<4x512xf32>
    %251 = arith.mulf %249, %250 : vector<4x512xf32>
    %c6 = arith.constant 6 : index
    %c0_87 = arith.constant 0 : index
    %c0_88 = arith.constant 0 : index
    %252 = vector.load %arg2[%c6, %c0_87, %c0_88] : memref<9x8x4xf32, #tpu.memory_space<vmem>>, vector<1x8x4xf32>
    %253 = vector.shape_cast %252 : vector<1x8x4xf32> to vector<8x4xf32>
    %cst_89 = arith.constant dense<0.000000e+00> : vector<8x512xf32>
    %254 = tpu.matmul %253, %251, %cst_89 {dimension_numbers = #tpu.dot_dimension_numbers<[1], [0], [0], [1], [0, 0, 1, 1], [], []>} : vector<8x4xf32>, vector<4x512xf32>, vector<8x512xf32> -> vector<8x512xf32>
    %255 = arith.addf %246, %254 : vector<8x512xf32>
    %256 = vector.extract_strided_slice %196 {offsets = [0, 16], sizes = [4, 496], strides = [1, 1]} : vector<4x512xf32> to vector<4x496xf32>
    %257 = vector.extract_strided_slice %196 {offsets = [0, 0], sizes = [4, 16], strides = [1, 1]} : vector<4x512xf32> to vector<4x16xf32>
    %258 = tpu.concatenate %256, %257 in 1 : vector<4x496xf32>, vector<4x16xf32> -> vector<4x512xf32>
    %259 = vector.broadcast %174 : vector<1x512xf32> to vector<4x512xf32>
    %260 = arith.mulf %258, %259 : vector<4x512xf32>
    %c7 = arith.constant 7 : index
    %c0_90 = arith.constant 0 : index
    %c0_91 = arith.constant 0 : index
    %261 = vector.load %arg2[%c7, %c0_90, %c0_91] : memref<9x8x4xf32, #tpu.memory_space<vmem>>, vector<1x8x4xf32>
    %262 = vector.shape_cast %261 : vector<1x8x4xf32> to vector<8x4xf32>
    %cst_92 = arith.constant dense<0.000000e+00> : vector<8x512xf32>
    %263 = tpu.matmul %262, %260, %cst_92 {dimension_numbers = #tpu.dot_dimension_numbers<[1], [0], [0], [1], [0, 0, 1, 1], [], []>} : vector<8x4xf32>, vector<4x512xf32>, vector<8x512xf32> -> vector<8x512xf32>
    %264 = arith.addf %255, %263 : vector<8x512xf32>
    %265 = vector.extract_strided_slice %196 {offsets = [0, 17], sizes = [4, 495], strides = [1, 1]} : vector<4x512xf32> to vector<4x495xf32>
    %266 = vector.extract_strided_slice %196 {offsets = [0, 0], sizes = [4, 17], strides = [1, 1]} : vector<4x512xf32> to vector<4x17xf32>
    %267 = tpu.concatenate %265, %266 in 1 : vector<4x495xf32>, vector<4x17xf32> -> vector<4x512xf32>
    %268 = vector.broadcast %195 : vector<1x512xf32> to vector<4x512xf32>
    %269 = arith.mulf %267, %268 : vector<4x512xf32>
    %c8 = arith.constant 8 : index
    %c0_93 = arith.constant 0 : index
    %c0_94 = arith.constant 0 : index
    %270 = vector.load %arg2[%c8, %c0_93, %c0_94] : memref<9x8x4xf32, #tpu.memory_space<vmem>>, vector<1x8x4xf32>
    %271 = vector.shape_cast %270 : vector<1x8x4xf32> to vector<8x4xf32>
    %cst_95 = arith.constant dense<0.000000e+00> : vector<8x512xf32>
    %272 = tpu.matmul %271, %269, %cst_95 {dimension_numbers = #tpu.dot_dimension_numbers<[1], [0], [0], [1], [0, 0, 1, 1], [], []>} : vector<8x4xf32>, vector<4x512xf32>, vector<8x512xf32> -> vector<8x512xf32>
    %273 = arith.addf %264, %272 : vector<8x512xf32>
    %c0_96 = arith.constant 0 : index
    %c0_97 = arith.constant 0 : index
    %274 = vector.load %arg3[%c0_96, %c0_97] : memref<8x1xf32, #tpu.memory_space<vmem>>, vector<8x1xf32>
    %275 = vector.broadcast %274 : vector<8x1xf32> to vector<8x512xf32>
    %276 = arith.addf %273, %275 : vector<8x512xf32>
    %cst_98 = arith.constant 0.000000e+00 : f32
    %277 = vector.broadcast %cst_98 : f32 to vector<8x512xf32>
    %278 = arith.maximumf %276, %277 : vector<8x512xf32>
    %279 = vector.extract_strided_slice %278 {offsets = [0, 495], sizes = [8, 17], strides = [1, 1]} : vector<8x512xf32> to vector<8x17xf32>
    %280 = vector.extract_strided_slice %278 {offsets = [0, 0], sizes = [8, 495], strides = [1, 1]} : vector<8x512xf32> to vector<8x495xf32>
    %281 = tpu.concatenate %279, %280 in 1 : vector<8x17xf32>, vector<8x495xf32> -> vector<8x512xf32>
    %282 = vector.broadcast %27 : vector<1x512xf32> to vector<8x512xf32>
    %283 = arith.mulf %281, %282 : vector<8x512xf32>
    %c0_99 = arith.constant 0 : index
    %c0_100 = arith.constant 0 : index
    %c0_101 = arith.constant 0 : index
    %284 = vector.load %arg4[%c0_99, %c0_100, %c0_101] : memref<9x8x8xf32, #tpu.memory_space<vmem>>, vector<1x8x8xf32>
    %285 = vector.shape_cast %284 : vector<1x8x8xf32> to vector<8x8xf32>
    %cst_102 = arith.constant dense<0.000000e+00> : vector<8x512xf32>
    %286 = tpu.matmul %285, %283, %cst_102 {dimension_numbers = #tpu.dot_dimension_numbers<[1], [0], [0], [1], [0, 0, 1, 1], [], []>} : vector<8x8xf32>, vector<8x512xf32>, vector<8x512xf32> -> vector<8x512xf32>
    %287 = vector.extract_strided_slice %278 {offsets = [0, 496], sizes = [8, 16], strides = [1, 1]} : vector<8x512xf32> to vector<8x16xf32>
    %288 = vector.extract_strided_slice %278 {offsets = [0, 0], sizes = [8, 496], strides = [1, 1]} : vector<8x512xf32> to vector<8x496xf32>
    %289 = tpu.concatenate %287, %288 in 1 : vector<8x16xf32>, vector<8x496xf32> -> vector<8x512xf32>
    %290 = vector.broadcast %48 : vector<1x512xf32> to vector<8x512xf32>
    %291 = arith.mulf %289, %290 : vector<8x512xf32>
    %c1_103 = arith.constant 1 : index
    %c0_104 = arith.constant 0 : index
    %c0_105 = arith.constant 0 : index
    %292 = vector.load %arg4[%c1_103, %c0_104, %c0_105] : memref<9x8x8xf32, #tpu.memory_space<vmem>>, vector<1x8x8xf32>
    %293 = vector.shape_cast %292 : vector<1x8x8xf32> to vector<8x8xf32>
    %cst_106 = arith.constant dense<0.000000e+00> : vector<8x512xf32>
    %294 = tpu.matmul %293, %291, %cst_106 {dimension_numbers = #tpu.dot_dimension_numbers<[1], [0], [0], [1], [0, 0, 1, 1], [], []>} : vector<8x8xf32>, vector<8x512xf32>, vector<8x512xf32> -> vector<8x512xf32>
    %295 = arith.addf %286, %294 : vector<8x512xf32>
    %296 = vector.extract_strided_slice %278 {offsets = [0, 497], sizes = [8, 15], strides = [1, 1]} : vector<8x512xf32> to vector<8x15xf32>
    %297 = vector.extract_strided_slice %278 {offsets = [0, 0], sizes = [8, 497], strides = [1, 1]} : vector<8x512xf32> to vector<8x497xf32>
    %298 = tpu.concatenate %296, %297 in 1 : vector<8x15xf32>, vector<8x497xf32> -> vector<8x512xf32>
    %299 = vector.broadcast %69 : vector<1x512xf32> to vector<8x512xf32>
    %300 = arith.mulf %298, %299 : vector<8x512xf32>
    %c2_107 = arith.constant 2 : index
    %c0_108 = arith.constant 0 : index
    %c0_109 = arith.constant 0 : index
    %301 = vector.load %arg4[%c2_107, %c0_108, %c0_109] : memref<9x8x8xf32, #tpu.memory_space<vmem>>, vector<1x8x8xf32>
    %302 = vector.shape_cast %301 : vector<1x8x8xf32> to vector<8x8xf32>
    %cst_110 = arith.constant dense<0.000000e+00> : vector<8x512xf32>
    %303 = tpu.matmul %302, %300, %cst_110 {dimension_numbers = #tpu.dot_dimension_numbers<[1], [0], [0], [1], [0, 0, 1, 1], [], []>} : vector<8x8xf32>, vector<8x512xf32>, vector<8x512xf32> -> vector<8x512xf32>
    %304 = arith.addf %295, %303 : vector<8x512xf32>
    %305 = vector.extract_strided_slice %278 {offsets = [0, 511], sizes = [8, 1], strides = [1, 1]} : vector<8x512xf32> to vector<8x1xf32>
    %306 = vector.extract_strided_slice %278 {offsets = [0, 0], sizes = [8, 511], strides = [1, 1]} : vector<8x512xf32> to vector<8x511xf32>
    %307 = tpu.concatenate %305, %306 in 1 : vector<8x1xf32>, vector<8x511xf32> -> vector<8x512xf32>
    %308 = vector.broadcast %90 : vector<1x512xf32> to vector<8x512xf32>
    %309 = arith.mulf %307, %308 : vector<8x512xf32>
    %c3_111 = arith.constant 3 : index
    %c0_112 = arith.constant 0 : index
    %c0_113 = arith.constant 0 : index
    %310 = vector.load %arg4[%c3_111, %c0_112, %c0_113] : memref<9x8x8xf32, #tpu.memory_space<vmem>>, vector<1x8x8xf32>
    %311 = vector.shape_cast %310 : vector<1x8x8xf32> to vector<8x8xf32>
    %cst_114 = arith.constant dense<0.000000e+00> : vector<8x512xf32>
    %312 = tpu.matmul %311, %309, %cst_114 {dimension_numbers = #tpu.dot_dimension_numbers<[1], [0], [0], [1], [0, 0, 1, 1], [], []>} : vector<8x8xf32>, vector<8x512xf32>, vector<8x512xf32> -> vector<8x512xf32>
    %313 = arith.addf %304, %312 : vector<8x512xf32>
    %314 = vector.broadcast %111 : vector<1x512xf32> to vector<8x512xf32>
    %315 = arith.mulf %278, %314 : vector<8x512xf32>
    %c4_115 = arith.constant 4 : index
    %c0_116 = arith.constant 0 : index
    %c0_117 = arith.constant 0 : index
    %316 = vector.load %arg4[%c4_115, %c0_116, %c0_117] : memref<9x8x8xf32, #tpu.memory_space<vmem>>, vector<1x8x8xf32>
    %317 = vector.shape_cast %316 : vector<1x8x8xf32> to vector<8x8xf32>
    %cst_118 = arith.constant dense<0.000000e+00> : vector<8x512xf32>
    %318 = tpu.matmul %317, %315, %cst_118 {dimension_numbers = #tpu.dot_dimension_numbers<[1], [0], [0], [1], [0, 0, 1, 1], [], []>} : vector<8x8xf32>, vector<8x512xf32>, vector<8x512xf32> -> vector<8x512xf32>
    %319 = arith.addf %313, %318 : vector<8x512xf32>
    %320 = vector.extract_strided_slice %278 {offsets = [0, 1], sizes = [8, 511], strides = [1, 1]} : vector<8x512xf32> to vector<8x511xf32>
    %321 = vector.extract_strided_slice %278 {offsets = [0, 0], sizes = [8, 1], strides = [1, 1]} : vector<8x512xf32> to vector<8x1xf32>
    %322 = tpu.concatenate %320, %321 in 1 : vector<8x511xf32>, vector<8x1xf32> -> vector<8x512xf32>
    %323 = vector.broadcast %132 : vector<1x512xf32> to vector<8x512xf32>
    %324 = arith.mulf %322, %323 : vector<8x512xf32>
    %c5_119 = arith.constant 5 : index
    %c0_120 = arith.constant 0 : index
    %c0_121 = arith.constant 0 : index
    %325 = vector.load %arg4[%c5_119, %c0_120, %c0_121] : memref<9x8x8xf32, #tpu.memory_space<vmem>>, vector<1x8x8xf32>
    %326 = vector.shape_cast %325 : vector<1x8x8xf32> to vector<8x8xf32>
    %cst_122 = arith.constant dense<0.000000e+00> : vector<8x512xf32>
    %327 = tpu.matmul %326, %324, %cst_122 {dimension_numbers = #tpu.dot_dimension_numbers<[1], [0], [0], [1], [0, 0, 1, 1], [], []>} : vector<8x8xf32>, vector<8x512xf32>, vector<8x512xf32> -> vector<8x512xf32>
    %328 = arith.addf %319, %327 : vector<8x512xf32>
    %329 = vector.extract_strided_slice %278 {offsets = [0, 15], sizes = [8, 497], strides = [1, 1]} : vector<8x512xf32> to vector<8x497xf32>
    %330 = vector.extract_strided_slice %278 {offsets = [0, 0], sizes = [8, 15], strides = [1, 1]} : vector<8x512xf32> to vector<8x15xf32>
    %331 = tpu.concatenate %329, %330 in 1 : vector<8x497xf32>, vector<8x15xf32> -> vector<8x512xf32>
    %332 = vector.broadcast %153 : vector<1x512xf32> to vector<8x512xf32>
    %333 = arith.mulf %331, %332 : vector<8x512xf32>
    %c6_123 = arith.constant 6 : index
    %c0_124 = arith.constant 0 : index
    %c0_125 = arith.constant 0 : index
    %334 = vector.load %arg4[%c6_123, %c0_124, %c0_125] : memref<9x8x8xf32, #tpu.memory_space<vmem>>, vector<1x8x8xf32>
    %335 = vector.shape_cast %334 : vector<1x8x8xf32> to vector<8x8xf32>
    %cst_126 = arith.constant dense<0.000000e+00> : vector<8x512xf32>
    %336 = tpu.matmul %335, %333, %cst_126 {dimension_numbers = #tpu.dot_dimension_numbers<[1], [0], [0], [1], [0, 0, 1, 1], [], []>} : vector<8x8xf32>, vector<8x512xf32>, vector<8x512xf32> -> vector<8x512xf32>
    %337 = arith.addf %328, %336 : vector<8x512xf32>
    %338 = vector.extract_strided_slice %278 {offsets = [0, 16], sizes = [8, 496], strides = [1, 1]} : vector<8x512xf32> to vector<8x496xf32>
    %339 = vector.extract_strided_slice %278 {offsets = [0, 0], sizes = [8, 16], strides = [1, 1]} : vector<8x512xf32> to vector<8x16xf32>
    %340 = tpu.concatenate %338, %339 in 1 : vector<8x496xf32>, vector<8x16xf32> -> vector<8x512xf32>
    %341 = vector.broadcast %174 : vector<1x512xf32> to vector<8x512xf32>
    %342 = arith.mulf %340, %341 : vector<8x512xf32>
    %c7_127 = arith.constant 7 : index
    %c0_128 = arith.constant 0 : index
    %c0_129 = arith.constant 0 : index
    %343 = vector.load %arg4[%c7_127, %c0_128, %c0_129] : memref<9x8x8xf32, #tpu.memory_space<vmem>>, vector<1x8x8xf32>
    %344 = vector.shape_cast %343 : vector<1x8x8xf32> to vector<8x8xf32>
    %cst_130 = arith.constant dense<0.000000e+00> : vector<8x512xf32>
    %345 = tpu.matmul %344, %342, %cst_130 {dimension_numbers = #tpu.dot_dimension_numbers<[1], [0], [0], [1], [0, 0, 1, 1], [], []>} : vector<8x8xf32>, vector<8x512xf32>, vector<8x512xf32> -> vector<8x512xf32>
    %346 = arith.addf %337, %345 : vector<8x512xf32>
    %347 = vector.extract_strided_slice %278 {offsets = [0, 17], sizes = [8, 495], strides = [1, 1]} : vector<8x512xf32> to vector<8x495xf32>
    %348 = vector.extract_strided_slice %278 {offsets = [0, 0], sizes = [8, 17], strides = [1, 1]} : vector<8x512xf32> to vector<8x17xf32>
    %349 = tpu.concatenate %347, %348 in 1 : vector<8x495xf32>, vector<8x17xf32> -> vector<8x512xf32>
    %350 = vector.broadcast %195 : vector<1x512xf32> to vector<8x512xf32>
    %351 = arith.mulf %349, %350 : vector<8x512xf32>
    %c8_131 = arith.constant 8 : index
    %c0_132 = arith.constant 0 : index
    %c0_133 = arith.constant 0 : index
    %352 = vector.load %arg4[%c8_131, %c0_132, %c0_133] : memref<9x8x8xf32, #tpu.memory_space<vmem>>, vector<1x8x8xf32>
    %353 = vector.shape_cast %352 : vector<1x8x8xf32> to vector<8x8xf32>
    %cst_134 = arith.constant dense<0.000000e+00> : vector<8x512xf32>
    %354 = tpu.matmul %353, %351, %cst_134 {dimension_numbers = #tpu.dot_dimension_numbers<[1], [0], [0], [1], [0, 0, 1, 1], [], []>} : vector<8x8xf32>, vector<8x512xf32>, vector<8x512xf32> -> vector<8x512xf32>
    %355 = arith.addf %346, %354 : vector<8x512xf32>
    %c0_135 = arith.constant 0 : index
    %c0_136 = arith.constant 0 : index
    %356 = vector.load %arg5[%c0_135, %c0_136] : memref<8x1xf32, #tpu.memory_space<vmem>>, vector<8x1xf32>
    %357 = vector.broadcast %356 : vector<8x1xf32> to vector<8x512xf32>
    %358 = arith.addf %355, %357 : vector<8x512xf32>
    %cst_137 = arith.constant 0.000000e+00 : f32
    %359 = vector.broadcast %cst_137 : f32 to vector<8x512xf32>
    %360 = arith.maximumf %358, %359 : vector<8x512xf32>
    %c0_138 = arith.constant 0 : index
    %c0_139 = arith.constant 0 : index
    %361 = vector.load %arg6[%c0_138, %c0_139] : memref<8x512xf32, #tpu.memory_space<vmem>>, vector<8x512xf32>
    tpu.vector_store %arg6[%c0_138, %c0_139], %360 {strides = array<i32>} : memref<8x512xf32, #tpu.memory_space<vmem>>, vector<8x512xf32>,
    return
  }
  func.func @transform_0(%arg0: i32) -> (i32, i32) {
    %c0_i32 = arith.constant 0 : i32
    %c0_i32_0 = arith.constant 0 : i32
    return %c0_i32, %arg0 : i32, i32
  }
  func.func @transform_1(%arg0: i32) -> (i32, i32, i32) {
    %c0_i32 = arith.constant 0 : i32
    %c0_i32_0 = arith.constant 0 : i32
    %c0_i32_1 = arith.constant 0 : i32
    %c0_i32_2 = arith.constant 0 : i32
    return %c0_i32, %c0_i32_0, %c0_i32_1 : i32, i32, i32
  }
  func.func @transform_2(%arg0: i32) -> (i32, i32) {
    %c0_i32 = arith.constant 0 : i32
    %c0_i32_0 = arith.constant 0 : i32
    %c0_i32_1 = arith.constant 0 : i32
    return %c0_i32, %c0_i32_0 : i32, i32
  }
  func.func @transform_3(%arg0: i32) -> (i32, i32, i32) {
    %c0_i32 = arith.constant 0 : i32
    %c0_i32_0 = arith.constant 0 : i32
    %c0_i32_1 = arith.constant 0 : i32
    %c0_i32_2 = arith.constant 0 : i32
    return %c0_i32, %c0_i32_0, %c0_i32_1 : i32, i32, i32
  }
  func.func @transform_4(%arg0: i32) -> (i32, i32) {
    %c0_i32 = arith.constant 0 : i32
    %c0_i32_0 = arith.constant 0 : i32
    %c0_i32_1 = arith.constant 0 : i32
    return %c0_i32, %c0_i32_0 : i32, i32
  }
  func.func @transform_5(%arg0: i32) -> (i32, i32) {
    %c0_i32 = arith.constant 0 : i32
    %c0_i32_0 = arith.constant 0 : i32
    return %c0_i32, %arg0 : i32, i32
  }
}

</mosaic_0001>

<bundles_post_ra>
// kernel: encoder_forward.1
= control target key start
LH: loop header
LB: loop body
LE: loop exit
PB: predicated region body
PF: predicated region fallthrough
CT: control target
= control target key end

     0   :  { %v20_v0 = vlaneseq  ;;  %s2621_s22 = smov 17   ;;  %v2623_v18 = vmov 0.0   ;;  %vm334_vm6 = vcmask 1043456   ;;  %s2624_s23 = smov 15   ;;  %s3564_s0 = inlined_call_operand.vmem [shape: f32[4,512], index: 0, kind: input, shape index: {}]   ;;  %s3565_s1 = inlined_call_operand.vmem [shape: f32[9,8,4], index: 1, kind: input, shape index: {}]   ;;  %s3566_s2 = inlined_call_operand.vmem [shape: f32[8,1], index: 2, kind: input, shape index: {}]   ;;  %s3567_s4 = inlined_call_operand.vmem [shape: f32[8,1], index: 4, kind: input, shape index: {}]   ;;  %s3568_s3 = inlined_call_operand.vmem [shape: f32[9,8,8], index: 3, kind: input, shape index: {}]   ;;  %s3569_s5 = inlined_call_operand.vmem [shape: f32[8,512], index: 5, kind: output, shape index: {}]  }
   0x1   :  { %v2664_v1 = vld [vmem:[%s3564_s0 + $0x8] sm:$0xff]  ;;  %v2680_v6 = vld [vmem:[%s3564_s0] sm:$0xff]  ;;  %s2622_s0 = smov 16   ;;  %s2625_s24 = smov 1   ;;  %v2511_v20 = vld [vmem:[%s3565_s1 + $0x18] sm:$0xff] }
   0x2   :  { %268 = vst [vmem:[#allocation1 + $0x10] ss:$2 sm:$0xff] %v2664_v1  ;;  %v2667_v2 = vand.u32 127, %v20_v0  ;;  %s2626_s25 = smov 127   ;;  %s2627_s26 = smov 113  }
   0x3   :  { %260 = vst [vmem:[#allocation1] ss:$2 sm:$0xff] %v2664_v1  ;;  %s2628_s27 = smov 112   ;;  %s2629_s28 = smov 111  }
   0x4   :  { %v2671_v3 = vadd.s32 256, %v2667_v2  ;;  %v2674_v4 = vadd.s32 384, %v2667_v2  ;;  %v2730_v30 = vadd.s32 128, %v2667_v2  ;;  %v29_v38 = vand.u32 255, %v2667_v2 }
   0x6   :  { %v32_v5 = vand.u32 255, %v2674_v4  ;;  %v31_v7 = vand.u32 255, %v2671_v3  ;;  %v30_v33 = vand.u32 255, %v2730_v30  ;;  %v2751_v39 = vshra.s32 %v29_v38, 4 }
   0x8   :  { %v2686_v11 = vshra.s32 %v32_v5, 4  ;;  %v2689_v12 = vshra.s32 %v31_v7, 4  ;;  %v2742_v36 = vshra.s32 %v30_v33, 4  ;;  %vm133_vm10 = vcmp.ge.s32.totalorder %v2751_v39, 0 }
   0x9   :  { %v272_v8 = vld.sshfl [vmem:[#allocation1 + $0x18] sm:$0xff pattern:$0x75316420]  ;;  %v271_v9 = vld.sshfl [vmem:[#allocation1 + $0x10] sm:$0xff pattern:$0x75316420] }
   0xa   :  { %279 = vrot.lane.b32.xlu0 %v272_v8, %s2621_s22  ;;  %302 = vst [vmem:[#allocation1 + $0x10] ss:$2 sm:$0xff] %v2664_v1  ;;  %v261_v10 = vld.sshfl [vmem:[#allocation1 + $0x8] sm:$0xff pattern:$0x75316420]  ;;  %277 = vrot.lane.b32.xlu2 %v271_v9, %s2621_s22  ;;  %vm136_vm0 = vcmp.ge.s32.totalorder %v2686_v11, 0 }
   0xb   :  { %266 = vst [vmem:[#allocation1] ss:$2 sm:$0xff] %v2680_v6  ;;  %vm140_vm1 = vcmp.lt.s32.totalorder %v2686_v11, 16  ;;  %vm135_vm2 = vcmp.ge.s32.totalorder %v2689_v12, 0  ;;  %vm139_vm4 = vcmp.lt.s32.totalorder %v2689_v12, 16  ;;  %vm134_vm7 = vcmp.ge.s32.totalorder %v2742_v36, 0 }
   0xc   :  { %vm2694_vm3 = vmand %vm136_vm0, %vm140_vm1  ;;  %vm138_vm8 = vcmp.lt.s32.totalorder %v2742_v36, 16  ;;  %vm137_vm11 = vcmp.lt.s32.totalorder %v2751_v39, 16 }
   0xd   :  { %v2707_v19 = vsel %vm2694_vm3, 1.0, %v2623_v18  ;;  %vm2711_vm5 = vmand %vm135_vm2, %vm139_vm4  ;;  %vm3573_vm2 = vcmask 138240   ;;  %vm3576_vm4 = vcmask 130048  }
   0xe   :  { %v795_v21 = vrot.slane %v2707_v19, 4  ;;  %v2719_v22 = vsel %vm2711_vm5, 1.0, %v2623_v18  ;;  %vm2753_vm9 = vmand %vm134_vm7, %vm138_vm8  ;;  %vm3574_vm7 = vcmask 31744  }
   0xf   :  { %v2766_v45 = vsel %vm2753_vm9, 1.0, %v2623_v18  ;;  %vm2769_vm12 = vmand %vm133_vm10, %vm137_vm11 }
  0x10   :  { %v797_v26 = vsel %vm334_vm6, %v2719_v22, %v795_v21  ;;  %v794_v47 = vrot.slane %v2766_v45, 4  ;;  %v2777_v50 = vsel %vm2769_vm12, 1.0, %v2623_v18 }
  0x11   :  { %v306_v13 = vld.sshfl [vmem:[#allocation1 + $0x18] sm:$0xff pattern:$0x75316420]  ;;  %v305_v14 = vld.sshfl [vmem:[#allocation1 + $0x10] sm:$0xff pattern:$0x75316420]  ;;  %v801_v27 = vmul.f32 %v797_v26, %v2664_v1 }
  0x12   :  { %313 = vrot.lane.b32.xlu1 %v306_v13, %s2622_s0  ;;  %311 = vrot.lane.b32.xlu0 %v305_v14, %s2622_s0  ;;  %529 = vst [vmem:[#allocation1 + $0x10] ss:$2 sm:$0xff] %v2664_v1  ;;  %v269_v16 = vld.sshfl [vmem:[#allocation1] sm:$0xff pattern:$0x75316420]  ;;  %v796_v52 = vsel %vm334_vm6, %v2777_v50, %v794_v47  ;;  %v40_v13 = vadd.s32 4294967295, %v2686_v11 }
  0x13   :  { %v270_v17 = vld.sshfl [vmem:[#allocation1 + $0x8] sm:$0xff pattern:$0x75316420]  ;;  %v800_v53 = vmul.f32 %v796_v52, %v2680_v6  ;;  %v26_v52 = vand.u32 15, %v2730_v30 }
  0x14   :  { %295 = vst [vmem:[#allocation1] ss:$2 sm:$0xff] %v2664_v1  ;;  %275 = vrot.lane.b32.xlu2 %v270_v17, %s2621_s22  ;;  %vm44_vm13 = vcmp.ge.s32.totalorder %v40_v13, 0  ;;  %vm48_vm14 = vcmp.lt.s32.totalorder %v40_v13, 16 }
  0x15   :  { %vm2823_vm15 = vmand %vm44_vm13, %vm48_vm14 }
  0x19   :  { %v532_v23 = vld.sshfl [vmem:[#allocation1 + $0x10] sm:$0xff pattern:$0x75316420]  ;;  %v533_v24 = vld.sshfl [vmem:[#allocation1 + $0x18] sm:$0xff pattern:$0x75316420] }
  0x1a   :  { %262 = vrot.lane.b32.xlu0 %v261_v10, %s2621_s22  ;;  %663 = vst [vmem:[#allocation1 + $0x10] ss:$2 sm:$0xff] %v2664_v1  ;;  %v28_v10 = vand.u32 15, %v2674_v4 }
  0x1b   :  { %v296_v25 = vld.sshfl [vmem:[#allocation1 + $0x8] sm:$0xff pattern:$0x75316420] }
  0x1c   :  { %297 = vrot.lane.b32.xlu1 %v296_v25, %s2622_s0  ;;  %300 = vst [vmem:[#allocation1] ss:$2 sm:$0xff] %v2680_v6  ;;  %273 = vrot.lane.b32.xlu2 %v269_v16, %s2621_s22  ;;  %v2817_v14 = vadd.s32 4294967295, %v28_v10  ;;  %v2862_v47 = vadd.s32 1, %v28_v10 }
  0x1e   :  { %vm3572_vm0 = vcmp.ge.s32.totalorder %v2817_v14, 0  ;;  %vm3570_vm13 = vcmp.lt.s32.totalorder %v2862_v47, 16 }
  0x1f   :  { %vm64_vm1 = vmand %vm2823_vm15, %vm3572_vm0 }
  0x20   :  { %v2834_v25 = vsel %vm64_vm1, 1.0, %v2623_v18 }
  0x21   :  { %v666_v28 = vld.sshfl [vmem:[#allocation1 + $0x10] sm:$0xff pattern:$0x75316420]  ;;  %v667_v29 = vld.sshfl [vmem:[#allocation1 + $0x18] sm:$0xff pattern:$0x75316420] }
  0x22   :  { %808 = vst [vmem:[#allocation1 + $0x10] ss:$2 sm:$0xff] %v801_v27  ;;  %v2841_v27 = vsel %vm2823_vm15, 1.0, %v2623_v18 }
  0x23   :  { %v304_v31 = vld.sshfl [vmem:[#allocation1 + $0x8] sm:$0xff pattern:$0x75316420]  ;;  %v303_v32 = vld.sshfl [vmem:[#allocation1] sm:$0xff pattern:$0x75316420] }
  0x24   :  { %538 = vrot.lane.b32.xlu1 %v532_v23, %s2624_s23  ;;  %309 = vrot.lane.b32.xlu0 %v304_v31, %s2622_s0  ;;  %522 = vst [vmem:[#allocation1] ss:$2 sm:$0xff] %v2664_v1 }
  0x25   :  { %540 = vrot.lane.b32.xlu2 %v533_v24, %s2624_s23 }
  0x29   :  { %v2737_v34 = vld.sshfl [vmem:[#allocation1 + $0x10] sm:$0xff pattern:$0x75316420]  ;;  %v2739_v35 = vld.sshfl [vmem:[#allocation1 + $0x18] sm:$0xff pattern:$0x75316420] }
  0x2a   :  { %910 = vst [vmem:[#allocation1 + $0x10] ss:$2 sm:$0xff] %v2664_v1 }
  0x2b   :  { %v523_v37 = vld.sshfl [vmem:[#allocation1 + $0x8] sm:$0xff pattern:$0x75316420] }
  0x2c   :  { %672 = vrot.lane.b32.xlu0 %v666_v28, %s2625_s24  ;;  %307 = vrot.lane.b32.xlu1 %v303_v32, %s2622_s0  ;;  %527 = vst [vmem:[#allocation1] ss:$2 sm:$0xff] %v2680_v6 }
  0x2d   :  { %524 = vrot.lane.b32.xlu2 %v523_v37, %s2624_s23 }
  0x31   :  { %v914_v40 = vld.sshfl [vmem:[#allocation1 + $0x18] sm:$0xff pattern:$0x75316420]  ;;  %v913_v41 = vld.sshfl [vmem:[#allocation1 + $0x10] sm:$0xff pattern:$0x75316420] }
  0x32   :  { %1044 = vst [vmem:[#allocation1 + $0x10] ss:$2 sm:$0xff] %v2664_v1 }
  0x33   :  { %v531_v43 = vld.sshfl [vmem:[#allocation1 + $0x8] sm:$0xff pattern:$0x75316420]  ;;  %v530_v44 = vld.sshfl [vmem:[#allocation1] sm:$0xff pattern:$0x75316420] }
  0x34   :  { %674 = vrot.lane.b32.xlu1 %v667_v29, %s2625_s24  ;;  %536 = vrot.lane.b32.xlu0 %v531_v43, %s2624_s23  ;;  %656 = vst [vmem:[#allocation1] ss:$2 sm:$0xff] %v2664_v1  ;;  %v39_v43 = vadd.s32 4294967295, %v2689_v12 }
  0x35   :  { %919 = vrot.lane.b32.xlu2 %v913_v41, %s2626_s25 }
  0x36   :  { %vm43_vm8 = vcmp.ge.s32.totalorder %v39_v43, 0  ;;  %vm47_vm10 = vcmp.lt.s32.totalorder %v39_v43, 16 }
  0x37   :  { %vm2871_vm14 = vmand %vm43_vm8, %vm47_vm10 }
  0x38   :  { %vm124_vm8 = vmand %vm2823_vm15, %vm3570_vm13 }
  0x39   :  { %v1047_v48 = vld.sshfl [vmem:[#allocation1 + $0x10] sm:$0xff pattern:$0x75316420]  ;;  %v1048_v49 = vld.sshfl [vmem:[#allocation1 + $0x18] sm:$0xff pattern:$0x75316420] }
  0x3a   :  { %1178 = vst [vmem:[#allocation1 + $0x10] ss:$2 sm:$0xff] %v2664_v1 }
  0x3b   :  { %v657_v51 = vld.sshfl [vmem:[#allocation1 + $0x8] sm:$0xff pattern:$0x75316420] }
  0x3c   :  { %921 = vrot.lane.b32.xlu0 %v914_v40, %s2626_s25  ;;  %534 = vrot.lane.b32.xlu1 %v530_v44, %s2624_s23  ;;  %661 = vst [vmem:[#allocation1] ss:$2 sm:$0xff] %v2680_v6  ;;  %v27_v40 = vand.u32 15, %v2671_v3 }
  0x3e   :  { %v2858_v44 = vadd.s32 4294967295, %v27_v40 }
  0x40   :  { %vm3571_vm11 = vcmp.ge.s32.totalorder %v2858_v44, 0 }
  0x41   :  { %v1182_v54 = vld.sshfl [vmem:[#allocation1 + $0x18] sm:$0xff pattern:$0x75316420]  ;;  %v1181_v55 = vld.sshfl [vmem:[#allocation1 + $0x10] sm:$0xff pattern:$0x75316420]  ;;  %vm63_vm1 = vmand %vm2871_vm14, %vm3571_vm11 }
  0x42   :  { %1312 = vst [vmem:[#allocation1 + $0x10] ss:$2 sm:$0xff] %v2664_v1  ;;  %vm3575_vm11 = vcmask 121856  }
  0x43   :  { %v664_v56 = vld.sshfl [vmem:[#allocation1] sm:$0xff pattern:$0x75316420]  ;;  %v665_v57 = vld.sshfl [vmem:[#allocation1 + $0x8] sm:$0xff pattern:$0x75316420] }
  0x44   :  { %668 = vrot.lane.b32.xlu0 %v664_v56, %s2625_s24  ;;  %658 = vrot.lane.b32.xlu1 %v657_v51, %s2625_s24  ;;  %806 = vst [vmem:[#allocation1] ss:$2 sm:$0xff] %v800_v53  ;;  %v2884_v56 = vld [vmem:[%s3565_s1] sm:$0xff] }
  0x45   :  { %670 = vrot.lane.b32.xlu2 %v665_v57, %s2625_s24  ;;  %v38_v57 = vadd.s32 4294967295, %v2742_v36 }
  0x47   :  { %vm46_vm13 = vcmp.lt.s32.totalorder %v38_v57, 16 }
  0x49   :  { %v1316_v17 = vld.sshfl [vmem:[#allocation1 + $0x18] sm:$0xff pattern:$0x75316420]  ;;  %v1315_v4 = vld.sshfl [vmem:[#allocation1 + $0x10] sm:$0xff pattern:$0x75316420] }
  0x4b   :  { %v2790_v58 = vld.sshfl [vmem:[#allocation1] sm:$0xff pattern:$0x75316420]  ;;  %v2792_v59 = vld.sshfl [vmem:[#allocation1 + $0x8] sm:$0xff pattern:$0x75316420] }
  0x4c   :  { %1053 = vrot.lane.b32.xlu0 %v1047_v48, %s2627_s26  ;;  %1055 = vrot.lane.b32.xlu1 %v1048_v49, %s2627_s26  ;;  %908 = vst [vmem:[#allocation1] ss:$2 sm:$0xff] %v2680_v6 }
  0x4d   :  { %1187 = vrot.lane.b32.xlu2 %v1181_v55, %s2628_s27  ;;  %v37_v55 = vadd.s32 4294967295, %v2751_v39 }
  0x4f   :  { %vm41_vm10 = vcmp.ge.s32.totalorder %v37_v55, 0  ;;  %vm45_vm15 = vcmp.lt.s32.totalorder %v37_v55, 16 }
  0x53   :  { %v911_v60 = vld.sshfl [vmem:[#allocation1] sm:$0xff pattern:$0x75316420]  ;;  %v912_v61 = vld.sshfl [vmem:[#allocation1 + $0x8] sm:$0xff pattern:$0x75316420] }
  0x54   :  { %1189 = vrot.lane.b32.xlu0 %v1182_v54, %s2628_s27  ;;  %931 = vst [vmem:[#allocation1] ss:$2 sm:$0xff] %v2680_v6  ;;  %v25_v54 = vand.u32 15, %v2667_v2 }
  0x55   :  { %917 = vrot.lane.b32.xlu2 %v912_v61, %s2626_s25  ;;  %v2898_v61 = vsel %vm63_vm1, 1.0, %v2623_v18  ;;  %vm42_vm1 = vcmp.ge.s32.totalorder %v38_v57, 0 }
  0x56   :  { %v3010_v53 = vadd.s32 1, %v25_v54 }
  0x5b   :  { %v932_v62 = vld.sshfl [vmem:[#allocation1] sm:$0xff pattern:$0x75316420] }
  0x5c   :  { %915 = vrot.lane.b32.xlu0 %v911_v60, %s2626_s25  ;;  %933 = vrot.lane.b32.xlu1 %v932_v62, %s2626_s25  ;;  %1042 = vst [vmem:[#allocation1] ss:$2 sm:$0xff] %v2680_v6  ;;  %v2895_v60 = vadd.s32 4294967295, %v26_v52  ;;  %v2902_v62 = vadd.s32 4294967295, %v25_v54 }
  0x5e   :  { %vm3578_vm0 = vcmp.ge.s32.totalorder %v2895_v60, 0 }
  0x63   :  { %v1046_v63 = vld.sshfl [vmem:[#allocation1 + $0x8] sm:$0xff pattern:$0x75316420]  ;;  %v1045_v0 = vld.sshfl [vmem:[#allocation1] sm:$0xff pattern:$0x75316420] }
  0x64   :  { %1051 = vrot.lane.b32.xlu1 %v1046_v63, %s2627_s26  ;;  %1065 = vst [vmem:[#allocation1] ss:$2 sm:$0xff] %v2680_v6  ;;  %v2806_v1 = vpop.permute.xlu2 %277 }
  0x6b   :  { %v1066_v5 = vld.sshfl [vmem:[#allocation1] sm:$0xff pattern:$0x75316420] }
  0x6c   :  { %1067 = vrot.lane.b32.xlu2 %v1066_v5, %s2627_s26  ;;  %1176 = vst [vmem:[#allocation1] ss:$2 sm:$0xff] %v2680_v6  ;;  %v2914_v5 = vsel %vm2871_vm14, 1.0, %v2623_v18 }
  0x6e   :  { %v2810_v7 = vpop.permute.xlu2 %275 }
  0x6f   :  { %v283_v63 = vsel %vm3573_vm2, %v2810_v7, %v2806_v1 }
  0x73   :  { %v1180_v8 = vld.sshfl [vmem:[#allocation1 + $0x8] sm:$0xff pattern:$0x75316420]  ;;  %v1179_v9 = vld.sshfl [vmem:[#allocation1] sm:$0xff pattern:$0x75316420] }
  0x74   :  { %1185 = vrot.lane.b32.xlu0 %v1180_v8, %s2628_s27  ;;  %1199 = vst [vmem:[#allocation1] ss:$2 sm:$0xff] %v2680_v6  ;;  %1049 = vrot.lane.b32.xlu2 %v1045_v0, %s2627_s26  ;;  %v2909_v0 = vsel %vm124_vm8, 1.0, %v2623_v18  ;;  %vm2923_vm8 = vmand %vm41_vm10, %vm45_vm15  ;;  %vm3614_vm10 = vcmask 31744  }
  0x75   :  { %vm3615_vm15 = vmmov %vm3614_vm10 }
  0x76   :  { %v2819_v16 = vpop.permute.xlu2 %273 }
  0x7b   :  { %v1200_v21 = vld.sshfl [vmem:[#allocation1] sm:$0xff pattern:$0x75316420] }
  0x7c   :  { %1201 = vrot.lane.b32.xlu1 %v1200_v21, %s2628_s27  ;;  %1310 = vst [vmem:[#allocation1] ss:$2 sm:$0xff] %v2680_v6  ;;  %v280_v23 = vpop.permute.xlu0 %279  ;;  %1323 = vrot.lane.b32.xlu2 %v1316_v17, %s2629_s28  ;;  %v292_v17 = vmul.f32 %v2898_v61, %v283_v63 }
  0x7d   :  { %v284_v26 = vsel %vm3573_vm2, %v2806_v1, %v280_v23  ;;  %vm3577_vm2 = vcmp.ge.s32.totalorder %v2902_v62, 0 }
  0x7e   :  { %v293_v37 = vmul.f32 %v2834_v25, %v284_v26  ;;  %v2939_v26 = vadd.s32 1, %v27_v40 }
  0x7f   :  { %v541_v31 = vpop.permute.xlu2 %540 }
  0x83   :  { %v1313_v28 = vld.sshfl [vmem:[#allocation1] sm:$0xff pattern:$0x75316420]  ;;  %v1314_v29 = vld.sshfl [vmem:[#allocation1 + $0x8] sm:$0xff pattern:$0x75316420] }
  0x84   :  { %1333 = vst [vmem:[#allocation1] ss:$2 sm:$0xff] %v2680_v6  ;;  %1321 = vrot.lane.b32.xlu1 %v1315_v4, %s2629_s28  ;;  %v314_v32 = vpop.permute.xlu1 %313  ;;  %v312_v33 = vpop.permute.xlu0 %311  ;;  %1319 = vrot.lane.b32.xlu2 %v1314_v29, %s2629_s28  ;;  %v2855_v6 = vld [vmem:[%s3565_s1 + $0x8] sm:$0xff] }
  0x85   :  { %v318_v38 = vsel %vm3576_vm4, %v312_v33, %v314_v32 }
  0x86   :  { %v327_v41 = vmul.f32 %v2841_v27, %v318_v38 }
  0x87   :  { %v2866_v49 = vpop.permute.xlu2 %524 }
  0x88   :  { %2492 = vmatpush.msk.msra.mxu3 %vm334_vm6, %v327_v41 }
  0x89   :  { %2493 = vmatmul.msk.f32.vlgmr.msra.gmra.mxu3 %vm3574_vm7, %v2855_v6 }
  0x8a   :  { %2500 = vmatpush.msk.msrb.mxu3 %vm334_vm6, %v293_v37 }
  0x8b   :  { %v1334_v3 = vld.sshfl [vmem:[#allocation1] sm:$0xff pattern:$0x75316420] }
  0x8c   :  { %1183 = vrot.lane.b32.xlu1 %v1179_v9, %s2628_s27  ;;  %1335 = vrot.lane.b32.xlu0 %v1334_v3, %s2629_s28  ;;  %v263_v48 = vpop.permute.xlu0 %262 }
  0x8e   :  { %v298_v51 = vpop.permute.xlu1 %297 }
  0x8f   :  { %v2919_v13 = vpop.permute.xlu2 %919 }
  0x91   :  { %2501 = vmatmul.msk.f32.vlgmr.msrb.gmra.mxu3 %vm3574_vm7, %v2884_v56  ;;  %vm2930_vm7 = vmand %vm42_vm1, %vm46_vm13  ;;  %vm3616_vm1 = vcmask 138240  }
  0x92   :  { %vm61_vm13 = vmand %vm2923_vm8, %vm3577_vm2  ;;  %v2965_v32 = vsel %vm2930_vm7, 1.0, %v2623_v18  ;;  %vm3620_vm2 = vcmask 31744  }
  0x93   :  { %v2973_v37 = vsel %vm61_vm13, 1.0, %v2623_v18 }
  0x94   :  { %1317 = vrot.lane.b32.xlu0 %v1313_v28, %s2629_s28  ;;  %v2944_v28 = vld [vmem:[%s3565_s1 + $0x10] sm:$0xff] }
  0x96   :  { %v539_v8 = vpop.permute.xlu1 %538  ;;  %v310_v9 = vpop.permute.xlu0 %309 }
  0x97   :  { %v545_v10 = vsel %vm3575_vm11, %v539_v8, %v541_v31  ;;  %v317_v1 = vsel %vm3576_vm4, %v310_v9, %v312_v33  ;;  %vm62_vm11 = vmand %vm2930_vm7, %vm3578_vm0  ;;  %v282_v31 = vsel %vm3616_vm1, %v2819_v16, %v2810_v7  ;;  %v2970_v33 = vsel %vm2923_vm8, 1.0, %v2623_v18 }
  0x98   :  { %v554_v23 = vmul.f32 %v2909_v0, %v545_v10  ;;  %v326_v24 = vmul.f32 %v2914_v5, %v317_v1  ;;  %v2957_v29 = vsel %vm62_vm11, 1.0, %v2623_v18  ;;  %vm3617_vm11 = vmmov %vm3616_vm1 }
  0x99   :  { %v289_v38 = vsel %vm3617_vm11, %v263_v48, %v2819_v16  ;;  %v291_v3 = vmul.f32 %v2957_v29, %v282_v31  ;;  %vm3579_vm11 = vcmask 7168   ;;  %vm3622_vm0 = vmmov %vm3620_vm2 }
  0x9a   :  { %2490 = vmatpush.msk.msra.mxu2 %vm334_vm6, %v326_v24  ;;  %2509 = vmatpush.msk.msra.mxu3 %vm334_vm6, %v554_v23  ;;  %v290_v16 = vmul.f32 %v2973_v37, %v289_v38 }
  0x9b   :  { %2491 = vmatmul.msk.f32.vlgmr.msra.gmra.mxu2 %vm3614_vm10, %v2855_v6  ;;  %2510 = vmatmul.msk.f32.vlgmr.msra.gmra.mxu3 %vm3615_vm15, %v2944_v28  ;;  %vm3581_vm10 = vcmp.lt.s32.totalorder %v2939_v26, 16  ;;  %vm3618_vm15 = vcmp.ge.s32.totalorder %v2817_v14, 0 }
  0x9c   :  { %2498 = vmatpush.msk.msrb.mxu2 %vm334_vm6, %v292_v17  ;;  %vm148_vm13 = vmand %vm2694_vm3, %vm3618_vm15  ;;  %vm3619_vm15 = vcmp.ge.s32.totalorder %v2858_v44, 0 }
  0x9d   :  { %vm123_vm1 = vmand %vm2871_vm14, %vm3581_vm10  ;;  %v3016_v30 = vsel %vm148_vm13, 1.0, %v2623_v18  ;;  %vm3582_vm13 = vcmp.lt.s32.totalorder %v3010_v53, 16 }
  0x9e   :  { %v673_v40 = vpop.permute.xlu0 %672  ;;  %v308_v41 = vpop.permute.xlu1 %307  ;;  %vm3621_vm14 = vmmov %vm3620_vm2 }
  0x9f   :  { %v316_v7 = vsel %vm3576_vm4, %v308_v41, %v310_v9  ;;  %v323_v43 = vsel %vm3576_vm4, %v298_v51, %v308_v41  ;;  %v2992_v48 = vpop.permute.xlu2 %670  ;;  %v2998_v51 = vadd.s32 1, %v26_v52  ;;  %vm147_vm4 = vmand %vm2711_vm5, %vm3619_vm15  ;;  %v3019_v52 = vsel %vm123_vm1, 1.0, %v2623_v18 }
  0xa0   :  { %v325_v55 = vmul.f32 %v2965_v32, %v316_v7  ;;  %v324_v57 = vmul.f32 %v2970_v33, %v323_v43  ;;  %v3022_v63 = vsel %vm147_vm4, 1.0, %v2623_v18  ;;  %v678_v9 = vsel %vm3579_vm11, %v2992_v48, %v673_v40  ;;  %vm183_vm4 = vmand %vm2711_vm5, %vm3581_vm10 }
  0xa1   :  { %v687_v23 = vmul.f32 %v3022_v63, %v678_v9  ;;  %vm121_vm15 = vmand %vm2923_vm8, %vm3582_vm13 }
  0xa2   :  { %2488 = vmatpush.msk.msra.mxu1 %vm334_vm6, %v325_v55  ;;  %2486 = vmatpush.msk.msra.mxu0 %vm334_vm6, %v324_v57  ;;  %vm3624_vm5 = vmmov %vm3621_vm14  ;;  %v3064_v21 = vsel %vm121_vm15, 1.0, %v2623_v18  ;;  %vm3630_vm15 = vcmp.ge.s32.totalorder %v2895_v60, 0 }
  0xa3   :  { %2489 = vmatmul.msk.f32.vlgmr.msra.gmra.mxu1 %vm3620_vm2, %v2855_v6  ;;  %2499 = vmatmul.msk.f32.vlgmr.msrb.gmra.mxu2 %vm3621_vm14, %v2884_v56  ;;  %vm3580_vm2 = vcmp.lt.s32.totalorder %v2998_v51, 16  ;;  %vm3625_vm14 = vmmov %vm3624_vm5 }
  0xa4   :  { %2496 = vmatpush.msk.msrb.mxu1 %vm334_vm6, %v291_v3  ;;  %2487 = vmatmul.msk.f32.vlgmr.msra.gmra.mxu0 %vm3622_vm0, %v2855_v6  ;;  %vm3623_vm0 = vcmask 121856   ;;  %vm122_vm1 = vmand %vm2930_vm7, %vm3580_vm2  ;;  %v195_v3 = vadd.s32 1, %v2689_v12 }
  0xa5   :  { %2494 = vmatpush.msk.msrb.mxu0 %vm334_vm6, %v290_v16  ;;  %vm3626_vm7 = vmmov %vm3624_vm5  ;;  %v3067_v4 = vsel %vm122_vm1, 1.0, %v2623_v18 }
  0xa6   :  { %v675_v2 = vpop.permute.xlu1 %674  ;;  %v537_v54 = vpop.permute.xlu0 %536  ;;  %vm3627_vm8 = vmmov %vm3624_vm5 }
  0xa7   :  { %v679_v6 = vsel %vm3579_vm11, %v673_v40, %v675_v2  ;;  %v544_v10 = vsel %vm3623_vm0, %v537_v54, %v539_v8  ;;  %v3042_v24 = vpop.permute.xlu2 %1187  ;;  %vm3584_vm0 = vcmask 1039360   ;;  %v3061_v8 = vsel %vm183_vm4, 1.0, %v2623_v18 }
  0xa8   :  { %v688_v1 = vmul.f32 %v3016_v30, %v679_v6  ;;  %v553_v17 = vmul.f32 %v3019_v52, %v544_v10  ;;  %vm3628_vm4 = vcmask 121856  }
  0xa9   :  { %vm3629_vm1 = vmmov %vm3628_vm4 }
  0xaa   :  { %2507 = vmatpush.msk.msra.mxu2 %vm334_vm6, %v553_v17  ;;  %2518 = vmatpush.msk.msrb.mxu3 %vm334_vm6, %v688_v1 }
  0xab   :  { %2497 = vmatmul.msk.f32.vlgmr.msrb.gmra.mxu1 %vm3624_vm5, %v2884_v56  ;;  %2508 = vmatmul.msk.f32.vlgmr.msra.gmra.mxu2 %vm3625_vm14, %v2944_v28  ;;  %vm146_vm5 = vmand %vm2753_vm9, %vm3630_vm15  ;;  %vm3631_vm14 = vcmp.ge.s32.totalorder %v2902_v62, 0 }
  0xac   :  { %2516 = vmatpush.msk.msrb.mxu2 %vm334_vm6, %v687_v23  ;;  %2495 = vmatmul.msk.f32.vlgmr.msrb.gmra.mxu0 %vm3626_vm7, %v2884_v56  ;;  %vm145_vm7 = vmand %vm2769_vm12, %vm3631_vm14  ;;  %vm199_vm14 = vcmp.ge.s32.totalorder %v195_v3, 0  ;;  %v2529_v23 = vld [vmem:[%s3565_s1 + $0x28] sm:$0xff] }
  0xad   :  { %2519 = vmatmul.msk.f32.vlgmr.msrb.gmra.mxu3 %vm3627_vm8, %v2511_v20  ;;  %v3115_v55 = vsel %vm145_vm7, 1.0, %v2623_v18  ;;  %vm3638_vm7 = vcmp.ge.s32.totalorder %v2858_v44, 0 }
  0xae   :  { %2525 = vmatpush.msk.msra.mxu2 %vm334_vm6, %v2737_v34  ;;  %v3072_v31 = vpop.permute.xlu0 %921  ;;  %v535_v56 = vpop.permute.xlu1 %534  ;;  %2527 = vmatpush.msk.msra.mxu3 %vm334_vm6, %v2739_v35  ;;  %v2520_v35 = vld [vmem:[%s3565_s1 + $0x20] sm:$0xff] }
  0xaf   :  { %v926_v38 = vsel %vm3584_vm0, %v2919_v13, %v3072_v31  ;;  %v543_v40 = vsel %vm3628_vm4, %v535_v56, %v537_v54  ;;  %v550_v41 = vsel %vm3629_vm1, %v2866_v49, %v535_v56  ;;  %vm3632_vm4 = vmmov %vm3627_vm8  ;;  %v3103_v12 = vpop.permute.xlu2 %917  ;;  %v3112_v49 = vsel %vm146_vm5, 1.0, %v2623_v18 }
  0xb0   :  { %v939_v7 = vmul.f32 %v3061_v8, %v926_v38  ;;  %v551_v34 = vmul.f32 %v3064_v21, %v550_v41  ;;  %v552_v43 = vmul.f32 %v3067_v4, %v543_v40  ;;  %vm182_vm1 = vmand %vm2753_vm9, %vm3580_vm2  ;;  %v925_v16 = vsel %vm3584_vm0, %v3103_v12, %v2919_v13 }
  0xb1   :  { %vm3633_vm15 = vmmov %vm3632_vm4  ;;  %v194_v40 = vadd.s32 1, %v2742_v36  ;;  %vm3650_vm2 = vcmask 31744  }
  0xb2   :  { %2505 = vmatpush.msk.msra.mxu1 %vm334_vm6, %v552_v43  ;;  %2503 = vmatpush.msk.msra.mxu0 %vm334_vm6, %v551_v34  ;;  %vm3634_vm9 = vmmov %vm3632_vm4  ;;  %v193_v34 = vadd.s32 1, %v2751_v39 }
  0xb3   :  { %2506 = vmatmul.msk.f32.vlgmr.msra.gmra.mxu1 %vm3627_vm8, %v2944_v28  ;;  %2517 = vmatmul.msk.f32.vlgmr.msrb.gmra.mxu2 %vm3632_vm4, %v2511_v20  ;;  %vm203_vm8 = vcmp.lt.s32.totalorder %v195_v3, 16  ;;  %vm3651_vm10 = vmmov %vm3650_vm2 }
  0xb4   :  { %2504 = vmatmul.msk.f32.vlgmr.msra.gmra.mxu0 %vm3633_vm15, %v2944_v28  ;;  %2534 = vmatpush.msk.msrb.mxu2 %vm334_vm6, %v939_v7  ;;  %v3119_v28 = vsel %vm182_vm1, 1.0, %v2623_v18  ;;  %vm3127_vm5 = vmand %vm199_vm14, %vm203_vm8  ;;  %vm1057_vm8 = vcmask 924672   ;;  %v2538_v7 = vld [vmem:[%s3565_s1 + $0x30] sm:$0xff]  ;;  %vm201_vm0 = vcmp.lt.s32.totalorder %v193_v34, 16 }
  0xb5   :  { %2528 = vmatmul.msk.f32.vlgmr.msra.gmra.mxu3 %vm3634_vm9, %v2520_v35  ;;  %3635 = vst [vmem:[#allocation2_spill] sm:$0xff] %v3119_v28  ;;  %v938_v1 = vmul.f32 %v3119_v28, %v925_v16  ;;  %vm211_vm4 = vmand %vm3127_vm5, %vm3638_vm7 }
  0xb6   :  { %v669_v42 = vpop.permute.xlu0 %668  ;;  %v659_v57 = vpop.permute.xlu1 %658  ;;  %vm3639_vm1 = vmmov %vm3634_vm9  ;;  %v3146_v13 = vsel %vm211_vm4, 1.0, %v2623_v18  ;;  %vm3583_vm4 = vcmask 916480  }
  0xb7   :  { %v677_v9 = vsel %vm3579_vm11, %v669_v42, %v2992_v48  ;;  %v684_v2 = vsel %vm3579_vm11, %v659_v57, %v669_v42  ;;  %vm3640_vm15 = vmmov %vm3639_vm1  ;;  %3642 = vst [vmem:[#allocation3_spill] sm:$0xff] %v3146_v13 }
  0xb8   :  { %v686_v6 = vmul.f32 %v3112_v49, %v677_v9  ;;  %v685_v10 = vmul.f32 %v3115_v55, %v684_v2  ;;  %vm3641_vm14 = vmmov %vm3639_vm1 }
  0xb9   :  { %vm3643_vm9 = vmmov %vm3639_vm1 }
  0xba   :  { %2514 = vmatpush.msk.msrb.mxu1 %vm334_vm6, %v686_v6  ;;  %2512 = vmatpush.msk.msrb.mxu0 %vm334_vm6, %v685_v10  ;;  %vm3644_vm7 = vmmov %vm3639_vm1  ;;  %v3224_v10 = vld [vmem:[%s3565_s1 + $0x38] sm:$0xff] }
  0xbb   :  { %2515 = vmatmul.msk.f32.vlgmr.msrb.gmra.mxu1 %vm3639_vm1, %v2511_v20  ;;  %2526 = vmatmul.msk.f32.vlgmr.msra.gmra.mxu2 %vm3640_vm15, %v2520_v35 }
  0xbc   :  { %2523 = vmatpush.msk.msra.mxu1 %vm334_vm6, %v2792_v59  ;;  %2513 = vmatmul.msk.f32.vlgmr.msrb.gmra.mxu0 %vm3641_vm14, %v2511_v20  ;;  %v196_v20 = vadd.s32 1, %v2686_v11 }
  0xbd   :  { %2521 = vmatpush.msk.msra.mxu0 %vm334_vm6, %v2790_v58  ;;  %v3164_v58 = vsel %vm3127_vm5, 1.0, %v2623_v18 }
  0xbe   :  { %2532 = vmatpush.msk.msrb.mxu1 %vm334_vm6, %v938_v1  ;;  %v1054_v44 = vpop.permute.xlu0 %1053  ;;  %v1056_v48 = vpop.permute.xlu1 %1055  ;;  %vm200_vm15 = vcmp.ge.s32.totalorder %v196_v20, 0  ;;  %vm204_vm14 = vcmp.lt.s32.totalorder %v196_v20, 16  ;;  %3645 = vst [vmem:[#allocation4_spill] sm:$0xff] %v3164_v58 }
  0xbf   :  { %v1060_v17 = vsel %vm1057_vm8, %v1054_v44, %v1056_v48  ;;  %vm3171_vm11 = vmand %vm200_vm15, %vm204_vm14  ;;  %vm3649_vm15 = vcmp.ge.s32.totalorder %v2817_v14, 0 }
  0xc0   :  { %v1073_v59 = vmul.f32 %v3146_v13, %v1060_v17  ;;  %vm212_vm14 = vmand %vm3171_vm11, %vm3649_vm15 }
  0xc1   :  { %v3203_v46 = vsel %vm212_vm14, 1.0, %v2623_v18 }
  0xc2   :  { %2543 = vmatpush.msk.msra.mxu2 %vm334_vm6, %v1073_v59  ;;  %3652 = vst [vmem:[#allocation5_spill] sm:$0xff] %v3203_v46 }
  0xc3   :  { %2524 = vmatmul.msk.f32.vlgmr.msra.gmra.mxu1 %vm3643_vm9, %v2520_v35  ;;  %2535 = vmatmul.msk.f32.vlgmr.msrb.gmra.mxu2 %vm3644_vm7, %v2529_v23  ;;  %vm181_vm9 = vmand %vm2769_vm12, %vm3582_vm13  ;;  %vm3648_vm7 = vcmp.lt.s32.totalorder %v2862_v47, 16  ;;  %vm198_vm12 = vcmp.ge.s32.totalorder %v194_v40, 0  ;;  %vm202_vm13 = vcmp.lt.s32.totalorder %v194_v40, 16  ;;  %v2630_v40 = vmov 0  }
  0xc4   :  { %2522 = vmatmul.msk.f32.vlgmr.msra.gmra.mxu0 %vm3639_vm1, %v2520_v35  ;;  %vm184_vm1 = vmand %vm2694_vm3, %vm3648_vm7  ;;  %v3197_v39 = vsel %vm181_vm9, 1.0, %v2623_v18  ;;  %2619 = vset.pattern.permute.xlu1 %v2630_v40 }
  0xc5   :  { %v3200_v15 = vsel %vm184_vm1, 1.0, %v2623_v18  ;;  %vm3206_vm3 = vmand %vm198_vm12, %vm202_vm13  ;;  %vm3659_vm13 = vcmp.ge.s32.totalorder %v2895_v60, 0  ;;  %vm3661_vm1 = vcmask 31744   ;;  %2620 = vset.pattern.permute.xlu0 %v2630_v40 }
  0xc6   :  { %v3166_v56 = vpop.permute.xlu0 %1189  ;;  %v1068_v36 = vpop.permute.xlu2 %1067  ;;  %vm210_vm7 = vmand %vm3206_vm3, %vm3659_vm13  ;;  %vm3670_vm13 = vcmask 916480  }
  0xc7   :  { %v1194_v11 = vsel %vm3583_vm4, %v3042_v24, %v3166_v56  ;;  %vm197_vm4 = vcmp.ge.s32.totalorder %v193_v34, 0  ;;  %v1070_v14 = vsel %vm1057_vm8, %v1056_v48, %v1068_v36  ;;  %vm3662_vm15 = vmmov %vm3661_vm1 }
  0xc8   :  { %v1207_v41 = vmul.f32 %v3164_v58, %v1194_v11  ;;  %vm3214_vm9 = vmand %vm197_vm4, %vm201_vm0  ;;  %v1074_v6 = vmul.f32 %v3203_v46, %v1070_v14  ;;  %vm3660_vm0 = vcmp.ge.s32.totalorder %v2902_v62, 0 }
  0xc9   :  { %vm209_vm4 = vmand %vm3214_vm9, %vm3660_vm0 }
  0xca   :  { %2552 = vmatpush.msk.msrb.mxu2 %vm334_vm6, %v1207_v41  ;;  %vm3663_vm14 = vmmov %vm3661_vm1  ;;  %v1444_v41 = vld [vmem:[%s3566_s2] sm:$0xff] }
  0xcb   :  { %2533 = vmatmul.msk.f32.vlgmr.msrb.gmra.mxu1 %vm3650_vm2, %v2529_v23  ;;  %2544 = vmatmul.msk.f32.vlgmr.msra.gmra.mxu2 %vm3651_vm10, %v2538_v7  ;;  %vm3655_vm10 = vcmask 1039360   ;;  %vm3666_vm12 = vmmov %vm3661_vm1 }
  0xcc   :  { %vm3656_vm2 = vmmov %vm3655_vm10  ;;  %1447 = vperm.xlu1 %2619, %v1444_v41  }
  0xcd   :  { %vm3673_vm0 = vmmov %vm3670_vm13 }
  0xce   :  { %v916_v43 = vpop.permute.xlu0 %915  ;;  %v934_v3 = vpop.permute.xlu1 %933 }
  0xcf   :  { %v924_v42 = vsel %vm3655_vm10, %v916_v43, %v3103_v12  ;;  %v936_v57 = vsel %vm3656_vm2, %v3072_v31, %v934_v3  ;;  %v1050_v60 = vpop.permute.xlu2 %1049  ;;  %v3242_v31 = vsel %vm210_vm7, 1.0, %v2623_v18  ;;  %v3245_v12 = vsel %vm209_vm4, 1.0, %v2623_v18  ;;  %vm3667_vm10 = vmmov %vm3661_vm1 }
  0xd0   :  { %v937_v9 = vmul.f32 %v3197_v39, %v924_v42  ;;  %v940_v2 = vmul.f32 %v3200_v15, %v936_v57  ;;  %3664 = vst [vmem:[#allocation6_spill] sm:$0xff] %v3242_v31  ;;  %vm3668_vm2 = vmmov %vm3661_vm1  ;;  %vm3674_vm4 = vcmp.lt.s32.totalorder %v2939_v26, 16  ;;  %v2556_v57 = vld [vmem:[%s3565_s1 + $0x40] sm:$0xff] }
  0xd1   :  { %3665 = vst [vmem:[#allocation7_spill] sm:$0xff] %v3245_v12  ;;  %vm3671_vm7 = vmmov %vm3661_vm1 }
  0xd2   :  { %2530 = vmatpush.msk.msrb.mxu0 %vm334_vm6, %v937_v9  ;;  %2536 = vmatpush.msk.msrb.mxu3 %vm334_vm6, %v940_v2  ;;  %v3313_v9 = vsel %vm3214_vm9, 1.0, %v2623_v18 }
  0xd3   :  { %2531 = vmatmul.msk.f32.vlgmr.msrb.gmra.mxu0 %vm3661_vm1, %v2529_v23  ;;  %2537 = vmatmul.msk.f32.vlgmr.msrb.gmra.mxu3 %vm3662_vm15, %v2529_v23  ;;  %vm247_vm1 = vmand %vm3127_vm5, %vm3674_vm4  ;;  %vm3675_vm15 = vcmp.lt.s32.totalorder %v2998_v51, 16  ;;  %vm3679_vm5 = vcmp.lt.s32.totalorder %v2862_v47, 16  ;;  %3681 = vst [vmem:[#allocation12_spill] sm:$0xff] %v3313_v9 }
  0xd4   :  { %2553 = vmatmul.msk.f32.vlgmr.msrb.gmra.mxu2 %vm3663_vm14, %v3224_v10  ;;  %2545 = vmatpush.msk.msra.mxu3 %vm334_vm6, %v1074_v6  ;;  %vm246_vm14 = vmand %vm3206_vm3, %vm3675_vm15 }
  0xd5   :  { %v3293_v26 = vsel %vm246_vm14, 1.0, %v2623_v18  ;;  %vm3685_vm4 = vmmov %vm3668_vm2  ;;  %vm1507_vm14 = vcmask 64512  }
  0xd6   :  { %v1052_v62 = vpop.permute.xlu1 %1051  ;;  %3678 = vst [vmem:[#allocation11_spill] sm:$0xff] %v3293_v26 }
  0xd7   :  { %v1059_v1 = vsel %vm1057_vm8, %v1052_v62, %v1054_v44  ;;  %v1058_v48 = vsel %vm1057_vm8, %v1050_v60, %v1052_v62  ;;  %v3259_v44 = vsel %vm3206_vm3, 1.0, %v2623_v18  ;;  %vm248_vm3 = vmand %vm3171_vm11, %vm3679_vm5 }
  0xd8   :  { %v1072_v17 = vmul.f32 %v3242_v31, %v1059_v1  ;;  %v1071_v23 = vmul.f32 %v3245_v12, %v1058_v48  ;;  %3669 = vst [vmem:[#allocation8_spill] sm:$0xff] %v3259_v44  ;;  %v3316_v2 = vsel %vm248_vm3, 1.0, %v2623_v18  ;;  %vm3693_vm3 = vcmask 138240  }
  0xd9   :  { %3682 = vst [vmem:[#allocation13_spill] sm:$0xff] %v3316_v2 }
  0xda   :  { %2539 = vmatpush.msk.msra.mxu0 %vm334_vm6, %v1071_v23  ;;  %2541 = vmatpush.msk.msra.mxu1 %vm334_vm6, %v1072_v17 }
  0xdb   :  { %2540 = vmatmul.msk.f32.vlgmr.msra.gmra.mxu0 %vm3666_vm12, %v2538_v7  ;;  %2542 = vmatmul.msk.f32.vlgmr.msra.gmra.mxu1 %vm3667_vm10, %v2538_v7  ;;  %vm3676_vm12 = vmmov %vm3668_vm2  ;;  %vm1325_vm10 = vcmask 908288  }
  0xdc   :  { %2546 = vmatmul.msk.f32.vlgmr.msra.gmra.mxu3 %vm3668_vm2, %v2538_v7  ;;  %v1324_v7 = vpop.permute.xlu2 %1323 }
  0xe4   :  { %v1320_v43 = vpop.permute.xlu2 %1319 }
  0xe6   :  { %v1186_v59 = vpop.permute.xlu0 %1185 }
  0xe7   :  { %v1193_v20 = vsel %vm3670_vm13, %v1186_v59, %v3042_v24  ;;  %v3273_v24 = vsel %vm3171_vm11, 1.0, %v2623_v18  ;;  %vm3680_vm13 = vmmov %vm3668_vm2  ;;  %vm3684_vm11 = vcmp.lt.s32.totalorder %v3010_v53, 16 }
  0xe8   :  { %v1206_v11 = vmul.f32 %v3259_v44, %v1193_v20  ;;  %3672 = vst [vmem:[#allocation9_spill] sm:$0xff] %v3273_v24 }
  0xea   :  { %2550 = vmatpush.msk.msrb.mxu1 %vm334_vm6, %v1206_v11 }
  0xeb   :  { %2551 = vmatmul.msk.f32.vlgmr.msrb.gmra.mxu1 %vm3671_vm7, %v3224_v10  ;;  %vm3683_vm7 = vmmov %vm3673_vm0 }
  0xee   :  { %v1202_v34 = vpop.permute.xlu1 %1201 }
  0xef   :  { %v1204_v36 = vsel %vm3673_vm0, %v3166_v56, %v1202_v34  ;;  %v3290_v56 = vsel %vm247_vm1, 1.0, %v2623_v18  ;;  %vm245_vm0 = vmand %vm3214_vm9, %vm3684_vm11 }
  0xf0   :  { %v1208_v14 = vmul.f32 %v3273_v24, %v1204_v36  ;;  %3677 = vst [vmem:[#allocation10_spill] sm:$0xff] %v3290_v56  ;;  %vm3686_vm1 = vmmov %vm3668_vm2  ;;  %v3332_v48 = vsel %vm245_vm0, 1.0, %v2623_v18  ;;  %vm3698_vm0 = vcmask 7168  }
  0xf1   :  { %3687 = vst [vmem:[#allocation14_spill] sm:$0xff] %v3332_v48  ;;  %vm3688_vm15 = vmmov %vm3686_vm1 }
  0xf2   :  { %2554 = vmatpush.msk.msrb.mxu3 %vm334_vm6, %v1208_v14 }
  0xf3   :  { %2555 = vmatmul.msk.f32.vlgmr.msrb.gmra.mxu3 %vm3676_vm12, %v3224_v10 }
  0xf6   :  { %v1322_v54 = vpop.permute.xlu1 %1321 }
  0xf7   :  { %v1328_v3 = vsel %vm1325_vm10, %v1322_v54, %v1324_v7  ;;  %v1327_v42 = vsel %vm1325_vm10, %v1320_v43, %v1322_v54 }
  0xf8   :  { %v1341_v51 = vmul.f32 %v3290_v56, %v1328_v3  ;;  %v1340_v35 = vmul.f32 %v3293_v26, %v1327_v42 }
  0xfa   :  { %2559 = vmatpush.msk.msra.mxu1 %vm334_vm6, %v1340_v35  ;;  %2561 = vmatpush.msk.msra.mxu2 %vm334_vm6, %v1341_v51 }
  0xfb   :  { %2560 = vmatmul.msk.f32.vlgmr.msra.gmra.mxu1 %vm3668_vm2, %v2556_v57  ;;  %2562 = vmatmul.msk.f32.vlgmr.msra.gmra.mxu2 %vm3680_vm13, %v2556_v57  ;;  %vm3694_vm2 = vmmov %vm3693_vm3  ;;  %vm3695_vm13 = vcmask 121856  }
  0xfc   :  { %vm3697_vm11 = vmmov %vm3694_vm2 }
  0xfe   :  { %v1184_v6 = vpop.permute.xlu1 %1183  ;;  %v1336_v60 = vpop.permute.xlu0 %1335 }
  0xff   :  { %v1192_v62 = vsel %vm3683_vm7, %v1184_v6, %v1186_v59  ;;  %v1338_v47 = vsel %vm1325_vm10, %v1324_v7, %v1336_v60  ;;  %vm3696_vm7 = vmmov %vm3694_vm2 }
 0x100   :  { %v1205_v38 = vmul.f32 %v3313_v9, %v1192_v62  ;;  %v1342_v1 = vmul.f32 %v3316_v2, %v1338_v47 }
 0x102   :  { %2548 = vmatpush.msk.msrb.mxu0 %vm334_vm6, %v1205_v38  ;;  %2563 = vmatpush.msk.msra.mxu3 %vm334_vm6, %v1342_v1 }
 0x103   :  { %2549 = vmatmul.msk.f32.vlgmr.msrb.gmra.mxu0 %vm3685_vm4, %v3224_v10  ;;  %2564 = vmatmul.msk.f32.vlgmr.msra.gmra.mxu3 %vm3686_vm1, %v2556_v57  ;;  %vm3699_vm4 = vmmov %vm3695_vm13 }
 0x104   :  { %vm3700_vm1 = vmmov %vm3699_vm4 }
 0x106   :  { %v1318_v17 = vpop.permute.xlu0 %1317 }
 0x107   :  { %v1326_v23 = vsel %vm1325_vm10, %v1318_v17, %v1320_v43 }
 0x108   :  { %v1339_v59 = vmul.f32 %v3332_v48, %v1326_v23 }
 0x10a   :  { %2557 = vmatpush.msk.msra.mxu0 %vm334_vm6, %v1339_v59  ;;  %vm3689_vm6 = vcmask 130048  }
 0x10b   :  { %2558 = vmatmul.msk.f32.vlgmr.msra.gmra.mxu0 %vm3688_vm15, %v2556_v57  ;;  %vm3690_vm9 = vmmov %vm3689_vm6 }
 0x10c   :  { %v424_v10 = vpop.f32.mrf.mxu3  ;;  %vm3691_vm12 = vmmov %vm3689_vm6 }
 0x10d   :  { %vm3692_vm5 = vmmov %vm3689_vm6 }
 0x10e   :  { %vm3701_vm15 = vmmov %vm3700_vm1 }
 0x114   :  { %v519_v18 = vpop.f32.mrf.mxu3 }
 0x115   :  { %v520_v12 = vadd.f32 %v519_v18, %v424_v10 }
 0x11e   :  { %v404_v16 = vpop.f32.mrf.mxu2  ;;  %v649_v43 = vpop.f32.mrf.mxu3 }
 0x120   :  { %v384_v53 = vpop.f32.mrf.mxu1 }
 0x121   :  { %v364_v40 = vpop.f32.mrf.mxu0 }
 0x126   :  { %v499_v11 = vpop.f32.mrf.mxu2 }
 0x127   :  { %v500_v17 = vadd.f32 %v499_v11, %v404_v16 }
 0x128   :  { %v479_v20 = vpop.f32.mrf.mxu1 }
 0x129   :  { %v459_v34 = vpop.f32.mrf.mxu0  ;;  %v480_v60 = vadd.f32 %v479_v20, %v384_v53 }
 0x12a   :  { %v460_v24 = vadd.f32 %v459_v34, %v364_v40 }
 0x12e   :  { %v629_v7 = vpop.f32.mrf.mxu2 }
 0x12f   :  { %v654_v26 = vadd.f32 %v629_v7, %v500_v17  ;;  %v655_v7 = vadd.f32 %v649_v43, %v520_v12 }
 0x130   :  { %v609_v41 = vpop.f32.mrf.mxu1  ;;  %v783_v35 = vpop.f32.mrf.mxu3 }
 0x131   :  { %v589_v54 = vpop.f32.mrf.mxu0  ;;  %v653_v38 = vadd.f32 %v609_v41, %v480_v60 }
 0x132   :  { %v652_v53 = vadd.f32 %v589_v54, %v460_v24 }
 0x136   :  { %v763_v14 = vpop.f32.mrf.mxu2 }
 0x137   :  { %v788_v44 = vadd.f32 %v763_v14, %v654_v26 }
 0x138   :  { %v743_v36 = vpop.f32.mrf.mxu1  ;;  %v901_v47 = vpop.f32.mrf.mxu3 }
 0x139   :  { %v723_v51 = vpop.f32.mrf.mxu0  ;;  %v787_v23 = vadd.f32 %v743_v36, %v653_v38 }
 0x13a   :  { %v786_v38 = vadd.f32 %v723_v51, %v652_v53 }
 0x13e   :  { %v881_v42 = vpop.f32.mrf.mxu2  ;;  %v1448_v60 = vpop.permute.xlu1 %1447 }
 0x13f   :  { %v906_v13 = vadd.f32 %v881_v42, %v788_v44  ;;  %v789_v44 = vadd.f32 %v783_v35, %v655_v7 }
 0x140   :  { %v861_v3 = vpop.f32.mrf.mxu1 }
 0x141   :  { %v841_v62 = vpop.f32.mrf.mxu0  ;;  %v905_v2 = vadd.f32 %v861_v3, %v787_v23 }
 0x146   :  { %v1015_v57 = vpop.f32.mrf.mxu2 }
 0x147   :  { %v1040_v16 = vadd.f32 %v1015_v57, %v906_v13  ;;  %v907_v13 = vadd.f32 %v901_v47, %v789_v44  ;;  %v2427_v57 = vld [vmem:[%s3567_s4] sm:$0xff] }
 0x148   :  { %v995_v6 = vpop.f32.mrf.mxu1 }
 0x149   :  { %v1039_v46 = vadd.f32 %v995_v6, %v905_v2 }
 0x14e   :  { %v1149_v59 = vpop.f32.mrf.mxu2 }
 0x14f   :  { %v1174_v3 = vadd.f32 %v1149_v59, %v1040_v16  ;;  %v2565_v16 = vld [vmem:[%s3568_s3 + $0x8] sm:$0xff] }
 0x150   :  { %v975_v48 = vpop.f32.mrf.mxu0 }
 0x156   :  { %v1035_v56 = vpop.f32.mrf.mxu3 }
 0x157   :  { %v1283_v31 = vpop.f32.mrf.mxu2 }
 0x158   :  { %v1129_v1 = vpop.f32.mrf.mxu1  ;;  %v1109_v20 = vpop.f32.mrf.mxu0  ;;  %v1308_v23 = vadd.f32 %v1283_v31, %v1174_v3  ;;  %v1041_v31 = vadd.f32 %v1035_v56, %v907_v13 }
 0x159   :  { %v1173_v9 = vadd.f32 %v1129_v1, %v1039_v46  ;;  %v904_v46 = vadd.f32 %v841_v62, %v786_v38 }
 0x15f   :  { %v1169_v36 = vpop.f32.mrf.mxu3 }
 0x160   :  { %v1175_v14 = vadd.f32 %v1169_v36, %v1041_v31  ;;  %v2574_v31 = vld [vmem:[%s3568_s3 + $0x10] sm:$0xff] }
 0x168   :  { %v1263_v58 = vpop.f32.mrf.mxu1 }
 0x169   :  { %v1307_v28 = vadd.f32 %v1263_v58, %v1173_v9 }
 0x176   :  { %v1303_v9 = vpop.f32.mrf.mxu3 }
 0x177   :  { %v1309_v42 = vadd.f32 %v1303_v9, %v1175_v14 }
 0x178   :  { %v1397_v41 = vpop.f32.mrf.mxu1 }
 0x179   :  { %v1441_v11 = vadd.f32 %v1397_v41, %v1307_v28  ;;  %v1038_v28 = vadd.f32 %v975_v48, %v904_v46 }
 0x17b   :  { %v1451_v17 = vadd.f32 %v1448_v60, %v1441_v11  ;;  %v1172_v12 = vadd.f32 %v1109_v20, %v1038_v28 }
 0x17d   :  { %v3338_v26 = vmax.f32 %v1451_v17, 0.0 }
 0x17e   :  { %v1417_v2 = vpop.f32.mrf.mxu2 }
 0x17f   :  { %v1442_v40 = vadd.f32 %v1417_v2, %v1308_v23  ;;  %1489 = vrot.lane.b32.xlu0 %v3338_v26, %s2622_s0 }
 0x180   :  { %v1243_v58 = vpop.f32.mrf.mxu0 }
 0x181   :  { %v1452_v24 = vadd.f32 %v1448_v60, %v1442_v40  ;;  %v1306_v34 = vadd.f32 %v1243_v58, %v1172_v12 }
 0x183   :  { %v3342_v10 = vmax.f32 %v1452_v24, 0.0 }
 0x185   :  { %1491 = vrot.lane.b32.xlu1 %v3342_v10, %s2622_s0  ;;  %1469 = vrot.lane.b32.xlu2 %v3342_v10, %s2621_s22 }
 0x186   :  { %v1437_v43 = vpop.f32.mrf.mxu3 }
 0x187   :  { %v1443_v35 = vadd.f32 %v1437_v43, %v1309_v42 }
 0x188   :  { %v1377_v18 = vpop.f32.mrf.mxu0 }
 0x189   :  { %v1440_v54 = vadd.f32 %v1377_v18, %v1306_v34  ;;  %v1453_v56 = vadd.f32 %v1448_v60, %v1443_v35 }
 0x18b   :  { %v1450_v51 = vadd.f32 %v1448_v60, %v1440_v54  ;;  %v3356_v48 = vmax.f32 %v1453_v56, 0.0 }
 0x18d   :  { %v3348_v6 = vmax.f32 %v1450_v51, 0.0  ;;  %1467 = vrot.lane.b32.xlu1 %v3338_v26, %s2621_s22 }
 0x18f   :  { %1465 = vrot.lane.b32.xlu0 %v3348_v6, %s2621_s22  ;;  %1487 = vrot.lane.b32.xlu2 %v3348_v6, %s2622_s0 }
 0x195   :  { %1677 = vrot.lane.b32.xlu1 %v3348_v6, %s2624_s23 }
 0x197   :  { %1459 = vrot.lane.b32.xlu0 %v3356_v48, %s2621_s22  ;;  %1484 = vrot.lane.b32.xlu2 %v3356_v48, %s2622_s0 }
 0x19d   :  { %1674 = vrot.lane.b32.xlu1 %v3356_v48, %s2624_s23 }
 0x19f   :  { %1681 = vrot.lane.b32.xlu0 %v3342_v10, %s2624_s23  ;;  %1679 = vrot.lane.b32.xlu2 %v3338_v26, %s2624_s23 }
 0x1a5   :  { %1791 = vrot.lane.b32.xlu1 %v3342_v10, %s2625_s24 }
 0x1a7   :  { %1789 = vrot.lane.b32.xlu0 %v3338_v26, %s2625_s24  ;;  %1787 = vrot.lane.b32.xlu2 %v3348_v6, %s2625_s24 }
 0x1ad   :  { %1991 = vrot.lane.b32.xlu1 %v3342_v10, %s2626_s25 }
 0x1af   :  { %1987 = vrot.lane.b32.xlu0 %v3348_v6, %s2626_s25  ;;  %1784 = vrot.lane.b32.xlu2 %v3356_v48, %s2625_s24 }
 0x1b5   :  { %2097 = vrot.lane.b32.xlu1 %v3348_v6, %s2627_s26 }
 0x1b7   :  { %1989 = vrot.lane.b32.xlu0 %v3338_v26, %s2626_s25  ;;  %2101 = vrot.lane.b32.xlu2 %v3342_v10, %s2627_s26 }
 0x1bd   :  { %2099 = vrot.lane.b32.xlu1 %v3338_v26, %s2627_s26 }
 0x1bf   :  { %2103 = vrot.lane.b32.xlu0 %v3356_v48, %s2627_s26  ;;  %1993 = vrot.lane.b32.xlu2 %v3356_v48, %s2626_s25 }
 0x1c5   :  { %2213 = vrot.lane.b32.xlu1 %v3356_v48, %s2628_s27 }
 0x1c7   :  { %2211 = vrot.lane.b32.xlu0 %v3342_v10, %s2628_s27  ;;  %2207 = vrot.lane.b32.xlu2 %v3348_v6, %s2628_s27 }
 0x1cd   :  { %2321 = vrot.lane.b32.xlu1 %v3342_v10, %s2629_s28 }
 0x1cf   :  { %2317 = vrot.lane.b32.xlu0 %v3348_v6, %s2629_s28  ;;  %2209 = vrot.lane.b32.xlu2 %v3338_v26, %s2628_s27 }
 0x1d5   :  { %2430 = vperm.xlu1 %2619, %v2427_v57  }
 0x1d7   :  { %2319 = vrot.lane.b32.xlu0 %v3338_v26, %s2629_s28  ;;  %2323 = vrot.lane.b32.xlu2 %v3356_v48, %s2629_s28 }
 0x1df   :  { %v1470_v62 = vpop.permute.xlu2 %1469 }
 0x1e9   :  { %v1488_v47 = vpop.permute.xlu2 %1487 }
 0x1f1   :  { %v1490_v1 = vpop.permute.xlu0 %1489  ;;  %v1485_v59 = vpop.permute.xlu2 %1484 }
 0x1f2   :  { %v1493_v53 = vsel %vm3689_vm6, %v1488_v47, %v1490_v1  ;;  %v1500_v20 = vsel %vm3690_vm9, %v1485_v59, %v1488_v47  ;;  %vm3702_vm6 = vmmov %vm3698_vm0 }
 0x1f3   :  { %v1502_v41 = vmul.f32 %v2965_v32, %v1493_v53  ;;  %v1501_v60 = vmul.f32 %v2970_v33, %v1500_v20  ;;  %vm3703_vm9 = vmmov %vm3698_vm0 }
 0x1f5   :  { %1526 = vmatpush.msrb.mxu0 %v1501_v60  ;;  %1546 = vmatpush.msrb.mxu1 %v1502_v41 }
 0x1f6   :  { %2566 = vmatmul.msk.f32.vlgmr.msrb.gmra.mxu0 %vm1507_vm14, %v2565_v16  ;;  %2567 = vmatmul.msk.f32.vlgmr.msrb.gmra.mxu1 %vm1507_vm14, %v2565_v16 }
 0x1f7   :  { %v1492_v11 = vpop.permute.xlu1 %1491 }
 0x1f8   :  { %v1494_v36 = vsel %vm3691_vm12, %v1490_v1, %v1492_v11  ;;  %v1495_v7 = vsel %vm3692_vm5, %v1492_v11, %v1485_v59  ;;  %vm3704_vm12 = vmmov %vm3698_vm0  ;;  %v2579_v59 = vld [vmem:[%s3568_s3 + $0x18] sm:$0xff]  ;;  %vm3705_vm5 = vcmask 1039360  }
 0x1f9   :  { %v1503_v32 = vmul.f32 %v2914_v5, %v1494_v36  ;;  %v1504_v33 = vmul.f32 %v2841_v27, %v1495_v7  ;;  %v1680_v38 = vpop.permute.xlu2 %1679  ;;  %v1483_v5 = vld [vmem:[%s3568_s3] sm:$0xff]  ;;  %v2589_v36 = vld [vmem:[%s3568_s3 + $0x28] sm:$0xff] }
 0x1fb   :  { %1566 = vmatpush.msrb.mxu2 %v1503_v32  ;;  %1586 = vmatpush.msrb.mxu3 %v1504_v33 }
 0x1fc   :  { %2568 = vmatmul.msk.f32.vlgmr.msrb.gmra.mxu2 %vm1507_vm14, %v2565_v16  ;;  %2569 = vmatmul.msk.f32.vlgmr.msrb.gmra.mxu3 %vm1507_vm14, %v2565_v16  ;;  %v3709_v16 = vld [vmem:[#allocation2_spill] sm:$0xff] }
 0x1ff   :  { %v1468_v3 = vpop.permute.xlu1 %1467 }
 0x200   :  { %v1472_v17 = vsel %vm3693_vm3, %v1468_v3, %v1470_v62  ;;  %vm3706_vm3 = vmmov %vm3705_vm5 }
 0x201   :  { %v1481_v23 = vmul.f32 %v2898_v61, %v1472_v17  ;;  %v1466_v2 = vpop.permute.xlu0 %1465  ;;  %v1788_v44 = vpop.permute.xlu2 %1787 }
 0x202   :  { %v1471_v27 = vsel %vm3694_vm2, %v1466_v2, %v1468_v3  ;;  %vm3707_vm2 = vmmov %vm3706_vm3  ;;  %v3711_v3 = vld [vmem:[#allocation7_spill] sm:$0xff] }
 0x203   :  { %v1480_v46 = vmul.f32 %v2957_v29, %v1471_v27  ;;  %1649 = vmatpush.msra.mxu2 %v1481_v23  ;;  %v3712_v23 = vld [vmem:[#allocation6_spill] sm:$0xff] }
 0x204   :  { %2572 = vmatmul.msk.f32.vlgmr.msra.gmra.mxu2 %vm1507_vm14, %v1483_v5 }
 0x205   :  { %1629 = vmatpush.msra.mxu1 %v1480_v46 }
 0x206   :  { %2571 = vmatmul.msk.f32.vlgmr.msra.gmra.mxu1 %vm1507_vm14, %v1483_v5 }
 0x207   :  { %v1678_v40 = vpop.permute.xlu1 %1677 }
 0x208   :  { %v1683_v58 = vsel %vm3695_vm13, %v1678_v40, %v1680_v38  ;;  %vm3708_vm13 = vmmov %vm3707_vm2 }
 0x209   :  { %v1692_v61 = vmul.f32 %v3067_v4, %v1683_v58  ;;  %v1460_v24 = vpop.permute.xlu0 %1459  ;;  %v1785_v9 = vpop.permute.xlu2 %1784  ;;  %v3714_v58 = vld [vmem:[#allocation3_spill] sm:$0xff] }
 0x20a   :  { %v1473_v13 = vsel %vm3696_vm7, %v1470_v62, %v1460_v24  ;;  %v1478_v28 = vsel %vm3697_vm11, %v1460_v24, %v1466_v2  ;;  %v1800_v4 = vsel %vm3698_vm0, %v1785_v9, %v1788_v44  ;;  %vm3710_vm7 = vcmask 916480   ;;  %v3715_v24 = vld [vmem:[#allocation5_spill] sm:$0xff] }
 0x20b   :  { %v1479_v12 = vmul.f32 %v2973_v37, %v1478_v28  ;;  %v1482_v29 = vmul.f32 %v2834_v25, %v1473_v13  ;;  %1735 = vmatpush.msrb.mxu1 %v1692_v61  ;;  %v1801_v54 = vmul.f32 %v3115_v55, %v1800_v4  ;;  %v2594_v13 = vld [vmem:[%s3568_s3 + $0x30] sm:$0xff]  ;;  %vm3718_vm11 = vmmov %vm3710_vm7 }
 0x20c   :  { %vm3719_vm0 = vmmov %vm3710_vm7 }
 0x20d   :  { %1609 = vmatpush.msra.mxu0 %v1479_v12  ;;  %1669 = vmatpush.msra.mxu3 %v1482_v29  ;;  %v3717_v29 = vld [vmem:[#allocation9_spill] sm:$0xff] }
 0x20e   :  { %2570 = vmatmul.msk.f32.vlgmr.msra.gmra.mxu0 %vm1507_vm14, %v1483_v5  ;;  %2573 = vmatmul.msk.f32.vlgmr.msra.gmra.mxu3 %vm1507_vm14, %v1483_v5  ;;  %v3713_v5 = vld [vmem:[#allocation12_spill] sm:$0xff] }
 0x20f   :  { %v1675_v34 = vpop.permute.xlu1 %1674  ;;  %2576 = vmatmul.msk.f32.vlgmr.msrb.gmra.mxu1 %vm1507_vm14, %v2574_v31 }
 0x210   :  { %v1690_v37 = vsel %vm3699_vm4, %v1675_v34, %v1678_v40 }
 0x211   :  { %v1691_v25 = vmul.f32 %v3064_v21, %v1690_v37  ;;  %v1682_v18 = vpop.permute.xlu0 %1681  ;;  %v3452_v14 = vpop.permute.xlu2 %2101  ;;  %v1894_v21 = vmul.f32 %v2777_v50, %v3348_v6  ;;  %v1897_v50 = vmul.f32 %v2707_v19, %v3356_v48  ;;  %v1896_v19 = vmul.f32 %v2719_v22, %v3342_v10  ;;  %v2584_v22 = vld [vmem:[%s3568_s3 + $0x20] sm:$0xff] }
 0x212   :  { %v1684_v43 = vsel %vm3700_vm1, %v1680_v38, %v1682_v18  ;;  %v1685_v42 = vsel %vm3701_vm15, %v1682_v18, %v1675_v34 }
 0x213   :  { %v1693_v51 = vmul.f32 %v3019_v52, %v1684_v43  ;;  %v1694_v35 = vmul.f32 %v2909_v0, %v1685_v42  ;;  %1715 = vmatpush.msrb.mxu0 %v1691_v25  ;;  %v3720_v25 = vld [vmem:[#allocation8_spill] sm:$0xff] }
 0x214   :  { %v2599_v43 = vld [vmem:[%s3568_s3 + $0x38] sm:$0xff] }
 0x215   :  { %1825 = vmatpush.msra.mxu0 %v1801_v54  ;;  %1755 = vmatpush.msrb.mxu2 %v1693_v51 }
 0x216   :  { %1775 = vmatpush.msrb.mxu3 %v1694_v35  ;;  %2575 = vmatmul.msk.f32.vlgmr.msrb.gmra.mxu0 %vm1507_vm14, %v2574_v31 }
 0x217   :  { %2577 = vmatmul.msk.f32.vlgmr.msrb.gmra.mxu2 %vm1507_vm14, %v2574_v31  ;;  %2578 = vmatmul.msk.f32.vlgmr.msrb.gmra.mxu3 %vm1507_vm14, %v2574_v31  ;;  %v1792_v55 = vpop.permute.xlu1 %1791 }
 0x218   :  { %1918 = vmatpush.msrb.mxu0 %v1894_v21  ;;  %v1795_v56 = vsel %vm3702_vm6, %v1792_v55, %v1785_v9  ;;  %v3722_v21 = vld [vmem:[#allocation10_spill] sm:$0xff] }
 0x219   :  { %v1804_v52 = vmul.f32 %v3016_v30, %v1795_v56  ;;  %v1790_v0 = vpop.permute.xlu0 %1789  ;;  %v1994_v57 = vpop.permute.xlu2 %1993  ;;  %v1895_v30 = vmul.f32 %v2766_v45, %v3338_v26 }
 0x21a   :  { %v1793_v62 = vsel %vm3703_vm9, %v1788_v44, %v1790_v0  ;;  %v1794_v47 = vsel %vm3704_vm12, %v1790_v0, %v1792_v55  ;;  %v3723_v0 = vld [vmem:[#allocation13_spill] sm:$0xff] }
 0x21b   :  { %v1802_v6 = vmul.f32 %v3112_v49, %v1793_v62  ;;  %v1803_v1 = vmul.f32 %v3022_v63, %v1794_v47  ;;  %1885 = vmatpush.msra.mxu3 %v1804_v52  ;;  %v2604_v62 = vld [vmem:[%s3568_s3 + $0x40] sm:$0xff] }
 0x21d   :  { %1978 = vmatpush.msrb.mxu3 %v1897_v50  ;;  %1845 = vmatpush.msra.mxu1 %v1802_v6 }
 0x21e   :  { %1865 = vmatpush.msra.mxu2 %v1803_v1  ;;  %2580 = vmatmul.msk.f32.vlgmr.msra.gmra.mxu0 %vm1507_vm14, %v2579_v59  ;;  %v3724_v1 = vld [vmem:[#allocation14_spill] sm:$0xff] }
 0x21f   :  { %2581 = vmatmul.msk.f32.vlgmr.msra.gmra.mxu1 %vm1507_vm14, %v2579_v59  ;;  %2582 = vmatmul.msk.f32.vlgmr.msra.gmra.mxu2 %vm1507_vm14, %v2579_v59  ;;  %v1992_v63 = vpop.permute.xlu1 %1991 }
 0x220   :  { %2583 = vmatmul.msk.f32.vlgmr.msra.gmra.mxu3 %vm1507_vm14, %v2579_v59  ;;  %1938 = vmatpush.msrb.mxu1 %v1895_v30  ;;  %v1997_v49 = vsel %vm3705_vm5, %v1992_v63, %v1994_v57  ;;  %v3725_v30 = vld [vmem:[#allocation11_spill] sm:$0xff] }
 0x221   :  { %1958 = vmatpush.msrb.mxu2 %v1896_v19  ;;  %v2006_v48 = vmul.f32 %v3061_v8, %v1997_v49  ;;  %v1988_v53 = vpop.permute.xlu0 %1987  ;;  %v2208_v41 = vpop.permute.xlu2 %2207 }
 0x222   :  { %v2003_v20 = vsel %vm3706_vm3, %v1994_v57, %v1988_v53 }
 0x223   :  { %v2007_v45 = vmul.f32 %v3200_v15, %v2003_v20  ;;  %2068 = vmatpush.msra.mxu2 %v2006_v48 }
 0x225   :  { %2088 = vmatpush.msra.mxu3 %v2007_v45 }
 0x226   :  { %2585 = vmatmul.msk.f32.vlgmr.msrb.gmra.mxu0 %vm1507_vm14, %v2584_v22 }
 0x227   :  { %2586 = vmatmul.msk.f32.vlgmr.msrb.gmra.mxu1 %vm1507_vm14, %v2584_v22  ;;  %2587 = vmatmul.msk.f32.vlgmr.msrb.gmra.mxu2 %vm1507_vm14, %v2584_v22  ;;  %v2098_v8 = vpop.permute.xlu1 %2097 }
 0x228   :  { %2588 = vmatmul.msk.f32.vlgmr.msrb.gmra.mxu3 %vm1507_vm14, %v2584_v22 }
 0x229   :  { %v1990_v26 = vpop.permute.xlu0 %1989  ;;  %v2210_v7 = vpop.permute.xlu2 %2209 }
 0x22a   :  { %v1995_v10 = vsel %vm3707_vm2, %v1988_v53, %v1990_v26  ;;  %v1996_v15 = vsel %vm3708_vm13, %v1990_v26, %v1992_v63  ;;  %v2215_v32 = vsel %vm3710_vm7, %v2208_v41, %v2210_v7 }
 0x22b   :  { %v2004_v60 = vmul.f32 %v3197_v39, %v1995_v10  ;;  %v2005_v11 = vmul.f32 %v3709_v16, %v1996_v15  ;;  %v2224_v27 = vmul.f32 %v3713_v5, %v2215_v32 }
 0x22d   :  { %2028 = vmatpush.msra.mxu0 %v2004_v60  ;;  %2048 = vmatpush.msra.mxu1 %v2005_v11 }
 0x22e   :  { %2590 = vmatmul.msk.f32.vlgmr.msra.gmra.mxu0 %vm1507_vm14, %v2589_v36 }
 0x22f   :  { %2591 = vmatmul.msk.f32.vlgmr.msra.gmra.mxu1 %vm1507_vm14, %v2589_v36  ;;  %2592 = vmatmul.msk.f32.vlgmr.msra.gmra.mxu2 %vm1507_vm14, %v2589_v36  ;;  %v2100_v39 = vpop.permute.xlu1 %2099 }
 0x230   :  { %2593 = vmatmul.msk.f32.vlgmr.msra.gmra.mxu3 %vm1507_vm14, %v2589_v36  ;;  %v2105_v33 = vsel %vm1057_vm8, %v2098_v8, %v2100_v39  ;;  %v2106_v38 = vsel %vm1057_vm8, %v2100_v39, %v3452_v14 }
 0x231   :  { %v2114_v17 = vmul.f32 %v3711_v3, %v2105_v33  ;;  %v2115_v2 = vmul.f32 %v3712_v23, %v2106_v38  ;;  %v2104_v44 = vpop.permute.xlu0 %2103  ;;  %v2324_v42 = vpop.permute.xlu2 %2323 }
 0x232   :  { %v2107_v46 = vsel %vm1057_vm8, %v3452_v14, %v2104_v44  ;;  %v2113_v40 = vsel %vm1057_vm8, %v2104_v44, %v2098_v8  ;;  %vm3716_vm8 = vmmov %vm3710_vm7  ;;  %v3721_v14 = vld [vmem:[#allocation4_spill] sm:$0xff] }
 0x233   :  { %v2116_v61 = vmul.f32 %v3714_v58, %v2107_v46  ;;  %v2117_v9 = vmul.f32 %v3715_v24, %v2113_v40  ;;  %2138 = vmatpush.msrb.mxu0 %v2114_v17  ;;  %2158 = vmatpush.msrb.mxu1 %v2115_v2 }
 0x235   :  { %2248 = vmatpush.msra.mxu0 %v2224_v27  ;;  %2178 = vmatpush.msrb.mxu2 %v2116_v61 }
 0x236   :  { %2198 = vmatpush.msrb.mxu3 %v2117_v9  ;;  %2595 = vmatmul.msk.f32.vlgmr.msrb.gmra.mxu0 %vm1507_vm14, %v2594_v13 }
 0x237   :  { %2596 = vmatmul.msk.f32.vlgmr.msrb.gmra.mxu1 %vm1507_vm14, %v2594_v13  ;;  %2597 = vmatmul.msk.f32.vlgmr.msrb.gmra.mxu2 %vm1507_vm14, %v2594_v13  ;;  %v2214_v28 = vpop.permute.xlu1 %2213 }
 0x238   :  { %2598 = vmatmul.msk.f32.vlgmr.msrb.gmra.mxu3 %vm1507_vm14, %v2594_v13  ;;  %v2223_v12 = vsel %vm3716_vm8, %v2214_v28, %v2208_v41 }
 0x239   :  { %v2227_v31 = vmul.f32 %v3717_v29, %v2223_v12  ;;  %v2212_v4 = vpop.permute.xlu0 %2211 }
 0x23a   :  { %v2216_v34 = vsel %vm3718_vm11, %v2210_v7, %v2212_v4  ;;  %v2217_v37 = vsel %vm3719_vm0, %v2212_v4, %v2214_v28 }
 0x23b   :  { %v2225_v18 = vmul.f32 %v3720_v25, %v2216_v34  ;;  %v2226_v54 = vmul.f32 %v3721_v14, %v2217_v37  ;;  %2308 = vmatpush.msra.mxu3 %v2227_v31 }
 0x23d   :  { %2268 = vmatpush.msra.mxu1 %v2225_v18  ;;  %2288 = vmatpush.msra.mxu2 %v2226_v54 }
 0x23e   :  { %2600 = vmatmul.msk.f32.vlgmr.msra.gmra.mxu0 %vm1507_vm14, %v2599_v43 }
 0x23f   :  { %2601 = vmatmul.msk.f32.vlgmr.msra.gmra.mxu1 %vm1507_vm14, %v2599_v43  ;;  %2602 = vmatmul.msk.f32.vlgmr.msra.gmra.mxu2 %vm1507_vm14, %v2599_v43  ;;  %v2322_v51 = vpop.permute.xlu1 %2321 }
 0x240   :  { %2603 = vmatmul.msk.f32.vlgmr.msra.gmra.mxu3 %vm1507_vm14, %v2599_v43  ;;  %v2327_v35 = vsel %vm1325_vm10, %v2322_v51, %v2324_v42 }
 0x241   :  { %v2336_v55 = vmul.f32 %v3722_v21, %v2327_v35  ;;  %v2318_v56 = vpop.permute.xlu0 %2317 }
 0x242   :  { %v2333_v52 = vsel %vm1325_vm10, %v2324_v42, %v2318_v56 }
 0x243   :  { %v2337_v57 = vmul.f32 %v3723_v0, %v2333_v52  ;;  %2398 = vmatpush.msrb.mxu2 %v2336_v55 }
 0x245   :  { %2418 = vmatpush.msrb.mxu3 %v2337_v57 }
 0x247   :  { %2607 = vmatmul.msk.f32.vlgmr.msrb.gmra.mxu2 %vm1507_vm14, %v2604_v62 }
 0x248   :  { %2608 = vmatmul.msk.f32.vlgmr.msrb.gmra.mxu3 %vm1507_vm14, %v2604_v62 }
 0x249   :  { %v2320_v47 = vpop.permute.xlu0 %2319 }
 0x24a   :  { %v2325_v50 = vsel %vm1325_vm10, %v2318_v56, %v2320_v47  ;;  %v2326_v6 = vsel %vm1325_vm10, %v2320_v47, %v2322_v51 }
 0x24b   :  { %v2334_v59 = vmul.f32 %v3724_v1, %v2325_v50  ;;  %v2335_v19 = vmul.f32 %v3725_v30, %v2326_v6 }
 0x24d   :  { %2358 = vmatpush.msrb.mxu0 %v2334_v59  ;;  %2378 = vmatpush.msrb.mxu1 %v2335_v19 }
 0x24e   :  { %2605 = vmatmul.msk.f32.vlgmr.msrb.gmra.mxu0 %vm1507_vm14, %v2604_v62  ;;  %2606 = vmatmul.msk.f32.vlgmr.msrb.gmra.mxu1 %vm1507_vm14, %v2604_v62 }
 0x273   :  { %v1548_v63 = vpop.f32.mrf.mxu1  ;;  %v1528_v49 = vpop.f32.mrf.mxu0 }
 0x27f   :  { %v1568_v48 = vpop.f32.mrf.mxu2  ;;  %v1588_v53 = vpop.f32.mrf.mxu3 }
 0x283   :  { %v1631_v20 = vpop.f32.mrf.mxu1 }
 0x284   :  { %v1632_v46 = vadd.f32 %v1631_v20, %v1548_v63 }
 0x287   :  { %v1651_v45 = vpop.f32.mrf.mxu2 }
 0x288   :  { %v1652_v40 = vadd.f32 %v1651_v45, %v1568_v48  ;;  %v2431_v48 = vpop.permute.xlu1 %2430 }
 0x28b   :  { %v1611_v41 = vpop.f32.mrf.mxu0 }
 0x28c   :  { %v1737_v26 = vpop.f32.mrf.mxu1  ;;  %v1612_v61 = vadd.f32 %v1611_v41, %v1528_v49 }
 0x28d   :  { %v1781_v28 = vadd.f32 %v1737_v26, %v1632_v46 }
 0x291   :  { %v1671_v22 = vpop.f32.mrf.mxu3 }
 0x292   :  { %v1672_v58 = vadd.f32 %v1671_v22, %v1588_v53 }
 0x293   :  { %v1717_v8 = vpop.f32.mrf.mxu0 }
 0x294   :  { %v1780_v13 = vadd.f32 %v1717_v8, %v1612_v61 }
 0x29a   :  { %v1757_v10 = vpop.f32.mrf.mxu2  ;;  %v1777_v15 = vpop.f32.mrf.mxu3 }
 0x29b   :  { %v1827_v60 = vpop.f32.mrf.mxu0  ;;  %v1782_v24 = vadd.f32 %v1757_v10, %v1652_v40  ;;  %v1783_v9 = vadd.f32 %v1777_v15, %v1672_v58 }
 0x29c   :  { %v1847_v16 = vpop.f32.mrf.mxu1  ;;  %v1890_v31 = vadd.f32 %v1827_v60, %v1780_v13 }
 0x29d   :  { %v1891_v4 = vadd.f32 %v1847_v16, %v1781_v28 }
 0x2a2   :  { %v1867_v11 = vpop.f32.mrf.mxu2 }
 0x2a3   :  { %v1887_v36 = vpop.f32.mrf.mxu3  ;;  %v1920_v7 = vpop.f32.mrf.mxu0  ;;  %v1892_v12 = vadd.f32 %v1867_v11, %v1782_v24 }
 0x2a4   :  { %v1940_v32 = vpop.f32.mrf.mxu1  ;;  %v1893_v29 = vadd.f32 %v1887_v36, %v1783_v9  ;;  %v1983_v43 = vadd.f32 %v1920_v7, %v1890_v31 }
 0x2a5   :  { %v1984_v42 = vadd.f32 %v1940_v32, %v1891_v4 }
 0x2aa   :  { %v1960_v39 = vpop.f32.mrf.mxu2 }
 0x2ab   :  { %v1980_v33 = vpop.f32.mrf.mxu3  ;;  %v2030_v38 = vpop.f32.mrf.mxu0  ;;  %v1985_v25 = vadd.f32 %v1960_v39, %v1892_v12 }
 0x2ac   :  { %v2050_v3 = vpop.f32.mrf.mxu1  ;;  %v1986_v18 = vadd.f32 %v1980_v33, %v1893_v29  ;;  %v2093_v21 = vadd.f32 %v2030_v38, %v1983_v43 }
 0x2ad   :  { %v2094_v55 = vadd.f32 %v2050_v3, %v1984_v42 }
 0x2b2   :  { %v2070_v17 = vpop.f32.mrf.mxu2 }
 0x2b3   :  { %v2090_v23 = vpop.f32.mrf.mxu3  ;;  %v2140_v2 = vpop.f32.mrf.mxu0  ;;  %v2095_v51 = vadd.f32 %v2070_v17, %v1985_v25 }
 0x2b4   :  { %v2160_v44 = vpop.f32.mrf.mxu1  ;;  %v2096_v35 = vadd.f32 %v2090_v23, %v1986_v18  ;;  %v2203_v0 = vadd.f32 %v2140_v2, %v2093_v21 }
 0x2b5   :  { %v2204_v57 = vadd.f32 %v2160_v44, %v2094_v55 }
 0x2ba   :  { %v2180_v5 = vpop.f32.mrf.mxu2 }
 0x2bb   :  { %v2200_v27 = vpop.f32.mrf.mxu3  ;;  %v2250_v14 = vpop.f32.mrf.mxu0  ;;  %v2205_v56 = vadd.f32 %v2180_v5, %v2095_v51 }
 0x2bc   :  { %v2270_v54 = vpop.f32.mrf.mxu1  ;;  %v2206_v52 = vadd.f32 %v2200_v27, %v2096_v35  ;;  %v2313_v50 = vadd.f32 %v2250_v14, %v2203_v0 }
 0x2bd   :  { %v2314_v6 = vadd.f32 %v2270_v54, %v2204_v57 }
 0x2c2   :  { %v2290_v34 = vpop.f32.mrf.mxu2 }
 0x2c3   :  { %v2310_v37 = vpop.f32.mrf.mxu3  ;;  %v2315_v62 = vadd.f32 %v2290_v34, %v2205_v56 }
 0x2c4   :  { %v2316_v47 = vadd.f32 %v2310_v37, %v2206_v52 }
 0x2ca   :  { %v2400_v1 = vpop.f32.mrf.mxu2 }
 0x2cb   :  { %v2420_v59 = vpop.f32.mrf.mxu3  ;;  %v2425_v30 = vadd.f32 %v2400_v1, %v2315_v62  ;;  %v2360_v63 = vpop.f32.mrf.mxu0 }
 0x2cc   :  { %v2426_v19 = vadd.f32 %v2420_v59, %v2316_v47  ;;  %v2380_v49 = vpop.f32.mrf.mxu1  ;;  %v2423_v53 = vadd.f32 %v2360_v63, %v2313_v50 }
 0x2cd   :  { %v2424_v20 = vadd.f32 %v2380_v49, %v2314_v6  ;;  %v2435_v41 = vadd.f32 %v2431_v48, %v2425_v30 }
 0x2ce   :  { %v2436_v45 = vadd.f32 %v2431_v48, %v2426_v19  ;;  %v2433_v22 = vadd.f32 %v2431_v48, %v2423_v53 }
 0x2cf   :  { %v2434_v8 = vadd.f32 %v2431_v48, %v2424_v20  ;;  %v2439_v26 = vmax.f32 %v2435_v41, 0.0 }
 0x2d0   :  { %v2440_v10 = vmax.f32 %v2436_v45, 0.0  ;;  %v2437_v15 = vmax.f32 %v2433_v22, 0.0 }
 0x2d1   :  { %v2438_v60 = vmax.f32 %v2434_v8, 0.0  ;;  %2443 = vst [vmem:[%s3569_s5 + $0x10] sm:$0xff] %v2439_v26 }
 0x2d2   :  { %2444 = vst [vmem:[%s3569_s5 + $0x18] sm:$0xff] %v2440_v10 }
 0x2d3   :  { %2441 = vst [vmem:[%s3569_s5] sm:$0xff] %v2437_v15 }
 0x2d4   :  { %2442 = vst [vmem:[%s3569_s5 + $0x8] sm:$0xff] %v2438_v60 }

</bundles_post_ra>
